<compile_context>
chip_gen: v6e
topology: v6e:2x2x1
jax: 0.10.0
libtpu: 0.0.40
codegen_flags: <defaults>
</compile_context>

<pallas_src>
import functools
import math

import jax
import jax.numpy as jnp
from jax import lax
from jax.experimental import pallas as pl
from jax.experimental.pallas import tpu as pltpu

BN_EPS = 1e-5
BN_SCALE = 1.0 / math.sqrt(1.0 + BN_EPS)  # eval BatchNorm2d with default running stats
_PAD = 4                                  # row halo (covers the 9x9 PSA conv)

# Offsets into the packed (27, W*C, W*C) weight slab (one matrix per height tap).
_W_CONV1, _W_U1C1, _W_U1C2, _W_U2C1, _W_U2C2, _W_GROUP, _W_PSA = 0, 5, 8, 11, 14, 17, 18


# ----------------------------- Pallas kernel --------------------------------

def _tf_conv_block_kernel(x_ref, w_ref, b_ref, o_ref, pad_ref, *, H, W, C, TB):
    """Entire TFConvBlock for TB images, activations resident in VMEM/vregs."""
    L = W * C
    P = _PAD

    def conv(a, w_base, k, bias_idx):
        # k x k 'same' conv of the (H, W*C) activation `a`:
        #  * width shift + channel mix are pre-folded host-side into ONE
        #    banded (W*C, W*C) bf16 matrix per height tap -> k lane-dense
        #    MXU matmuls (bf16 x bf16, f32 accumulate) instead of k*k.
        #  * height shift via a zero-halo VMEM scratch (halo rows stay 0).
        pad_ref[P:P + H, :] = a
        c0 = k // 2
        acc = jnp.broadcast_to(b_ref[bias_idx:bias_idx + 1, :], (H, L))
        for ki in range(k):
            rows = pad_ref[P + ki - c0:P + ki - c0 + H, :]
            acc = acc + jnp.dot(rows.astype(jnp.bfloat16), w_ref[w_base + ki],
                                preferred_element_type=jnp.float32)
        return acc

    # Zero only the halo rows (interior rows are overwritten before every conv,
    # halo rows are never written again, so they stay zero).
    pad_ref[0:P, :] = jnp.zeros((P, L), jnp.float32)
    pad_ref[P + H:P + H + P, :] = jnp.zeros((P, L), jnp.float32)

    for img in range(TB):                                    # TB images / grid step
        r0 = img * H
        a = conv(x_ref[r0:r0 + H, :], _W_CONV1, 5, 0)        # TFConvBlock.conv1 (5x5)
        a = conv(a, _W_U1C1, 3, 1)                           # unit1.conv1
        a = jnp.maximum(conv(a, _W_U1C2, 3, 2), 0.0)         # unit1.conv2 + BN + ReLU
        a = conv(a, _W_U2C1, 3, 3)                           # unit2.conv1
        a = jnp.maximum(conv(a, _W_U2C2, 3, 4), 0.0)         # unit2.conv2 + BN + ReLU

        # PSA grouped 1x1 conv: block-diagonal channel mix, one matmul.
        g = jnp.broadcast_to(b_ref[5:6, :], (H, L)) + jnp.dot(
            a.astype(jnp.bfloat16), w_ref[_W_GROUP],
            preferred_element_type=jnp.float32)
        # PSA's four k=3/5/7/9 group convs fused into one 9x9 block-diagonal
        # conv; the degenerate SE gate (sigmoid(0) = 0.5) is folded into the
        # packed weights/bias.
        att = conv(g, _W_PSA, 9, 6)
        o_ref[r0:r0 + H, :] = (g * att).astype(o_ref.dtype)


# ------------------------------ wrapper --------------------------------------

def _choose_images_per_step(B, H):
    """Images per grid step: amortize per-step overhead, but keep >= 2 grid
    steps so both v7x TensorCores get work under dimension_semantics='parallel'."""
    best = 1
    for tb in range(1, B + 1):
        if B % tb:
            continue
        if tb * H > 128:                 # keep activation slabs / vreg pressure modest
            continue
        if B >= 2 and B // tb < 2:       # v7x: never collapse to a 1-step grid
            continue
        best = tb
    return best


def tf_conv_block_forward(packed, x_nchw):
    w_all, bias = packed["w"], packed["b"]
    B, cin, H, Wd = x_nchw.shape
    L = w_all.shape[-1]
    C = L // Wd
    assert cin <= C

    TB = _choose_images_per_step(B, H)

    x = jnp.transpose(x_nchw, (0, 2, 3, 1))                       # NCHW -> NHWC
    if cin < C:
        x = jnp.pad(x, ((0, 0), (0, 0), (0, 0), (0, C - cin)))    # pad Cin up to C
    x2d = x.reshape(B * H, Wd * C)                                # lane-dense rows

    kernel = functools.partial(_tf_conv_block_kernel, H=H, W=Wd, C=C, TB=TB)
    out2d = pl.pallas_call(
        kernel,
        grid=(B // TB,),
        in_specs=[
            pl.BlockSpec((TB * H, L), lambda b: (b, 0)),
            # Grid-invariant weights / bias: whole-array VMEM residents
            # (single copy, no double-buffering).
            pl.BlockSpec(memory_space=pltpu.MemorySpace.VMEM),
            pl.BlockSpec(memory_space=pltpu.MemorySpace.VMEM),
        ],
        out_specs=pl.BlockSpec((TB * H, L), lambda b: (b, 0)),
        out_shape=jax.ShapeDtypeStruct((B * H, L), jnp.float32),
        scratch_shapes=[pltpu.VMEM((H + 2 * _PAD, L), jnp.float32)],
        compiler_params=pltpu.CompilerParams(
            dimension_semantics=("parallel",),       # batch blocks -> v7x 2 TCs
        ),
    )(x2d, w_all, bias)

    out = out2d.reshape(B, H, Wd, C)
    return jnp.transpose(out, (0, 3, 1, 2))                       # NHWC -> NCHW


# --------------------------- parameter packing -------------------------------

def init_raw_params(key, in_channels, out_channels):
    C = out_channels
    gC = C // 4
    keys = iter(jax.random.split(key, 32))

    def conv_init(kh, kw, ci, co):
        # PyTorch nn.Conv2d default init: U(-1/sqrt(fan_in), 1/sqrt(fan_in)).
        bound = 1.0 / math.sqrt(kh * kw * ci)
        w = jax.random.uniform(next(keys), (kh, kw, ci, co), jnp.float32, -bound, bound)
        b = jax.random.uniform(next(keys), (co,), jnp.float32, -bound, bound)
        return w, b

    p = {}
    p["conv1_w"], p["conv1_b"] = conv_init(5, 5, in_channels, C)
    p["u1c1_w"], p["u1c1_b"] = conv_init(3, 3, C, C)
    p["u1c2_w"], p["u1c2_b"] = conv_init(3, 3, C, C)
    p["u2c1_w"], p["u2c1_b"] = conv_init(3, 3, C, C)
    p["u2c2_w"], p["u2c2_b"] = conv_init(3, 3, C, C)
    p["group_w"], p["group_b"] = conv_init(1, 1, gC, C)   # grouped 1x1 (4 groups)
    for k in (3, 5, 7, 9):
        p[f"psa{k}_w"], p[f"psa{k}_b"] = conv_init(k, k, gC, gC)
    return p


def pack_params(raw, out_channels, W):
    """Fold BN / biases / SE*0.5, pre-band every tap, fold width taps (kj),
    and cast the weight slab to bf16 (f32 accumulation happens on the MXU)."""
    C = out_channels
    f32 = jnp.float32

    def folded_taps(w_hwio, ci_pad=None):
        # HWIO weights -> (kh, W*Ci, W*Co): the kj (width) taps are summed
        # into ONE banded channel-mix matrix per ki (height) tap:
        #   W_ki = sum_kj kron(eye(W, k=-(kj - kw//2)), w[ki, kj])
        # (exactly distributive:  rows @ (A+B) == rows @ A + rows @ B).
        kh, kw, ci, co = w_hwio.shape
        if ci_pad is not None and ci < ci_pad:
            w_hwio = jnp.pad(w_hwio, ((0, 0), (0, 0), (0, ci_pad - ci), (0, 0)))
            ci = ci_pad
        c0w = kw // 2
        taps = []
        for ki in range(kh):
            m = jnp.zeros((W * ci, W * co), f32)
            for kj in range(kw):
                band = jnp.eye(W, k=-(kj - c0w), dtype=f32)
                m = m + jnp.kron(band, w_hwio[ki, kj])
            taps.append(m)
        return jnp.stack(taps)

    # grouped 1x1 conv -> dense block-diagonal (C, C) channel-mix matrix
    gC = C // 4
    wg = raw["group_w"]  # (1, 1, C//4, C), feature_group_count = 4
    wg_full = jnp.zeros((C, C), f32)
    for co in range(C):
        grp = co // gC
        wg_full = wg_full.at[grp * gC:(grp + 1) * gC, co].set(wg[0, 0, :, co])

    # four per-group convs (k = 3/5/7/9) -> one 9x9 block-diagonal conv
    wpsa = jnp.zeros((9, 9, C, C), f32)
    for j, k in enumerate((3, 5, 7, 9)):
        off = (9 - k) // 2
        wpsa = wpsa.at[off:off + k, off:off + k,
                       j * gC:(j + 1) * gC, j * gC:(j + 1) * gC].set(raw[f"psa{k}_w"])
    bpsa = jnp.concatenate([raw[f"psa{k}_b"] for k in (3, 5, 7, 9)])

    w_all = jnp.concatenate([
        folded_taps(raw["conv1_w"], ci_pad=C),           # [ 0,  5)
        folded_taps(raw["u1c1_w"]),                      # [ 5,  8)
        folded_taps(raw["u1c2_w"] * BN_SCALE),           # [ 8, 11)  BN folded
        folded_taps(raw["u2c1_w"]),                      # [11, 14)
        folded_taps(raw["u2c2_w"] * BN_SCALE),           # [14, 17)  BN folded
        jnp.kron(jnp.eye(W, dtype=f32), wg_full)[None],  # [17, 18)  grouped 1x1
        folded_taps(wpsa * 0.5),                         # [18, 27)  PSA, SE*0.5 folded
    ], axis=0).astype(jnp.bfloat16)

    bias = jnp.stack([
        jnp.tile(raw["conv1_b"], W),
        jnp.tile(raw["u1c1_b"], W),
        jnp.tile(raw["u1c2_b"] * BN_SCALE, W),
        jnp.tile(raw["u2c1_b"], W),
        jnp.tile(raw["u2c2_b"] * BN_SCALE, W),
        jnp.tile(raw["group_b"], W),
        jnp.tile(bpsa * 0.5, W),
    ]).astype(f32)
    return {"w": w_all, "b": bias}


# ------------------------- pure-XLA reference --------------------------------

def tf_conv_block_reference(raw, x_nchw):
    """Reference with the PyTorch module structure (eval-mode BN / Dropout)."""
    prec = lax.Precision.HIGHEST
    dn = ("NHWC", "HWIO", "NHWC")

    def conv(x, w, b, pad, groups=1):
        y = lax.conv_general_dilated(
            x, w, window_strides=(1, 1), padding=[(pad, pad), (pad, pad)],
            dimension_numbers=dn, feature_group_count=groups, precision=prec)
        return y + b

    x = jnp.transpose(x_nchw, (0, 2, 3, 1))
    y = conv(x, raw["conv1_w"], raw["conv1_b"], 2)
    y = conv(y, raw["u1c1_w"], raw["u1c1_b"], 1)
    y = conv(y, raw["u1c2_w"], raw["u1c2_b"], 1)
    y = jnp.maximum(y * BN_SCALE, 0.0)                 # eval BN + dropout(id) + ReLU
    y = conv(y, raw["u2c1_w"], raw["u2c1_b"], 1)
    y = conv(y, raw["u2c2_w"], raw["u2c2_b"], 1)
    y = jnp.maximum(y * BN_SCALE, 0.0)

    g = conv(y, raw["group_w"], raw["group_b"], 0, groups=4)
    outs = []
    for j, k in enumerate((3, 5, 7, 9)):
        gj = g[..., 2 * j:2 * j + 2]
        cj = conv(gj, raw[f"psa{k}_w"], raw[f"psa{k}_b"], k // 2)
        # SEBlock(2, reduction=16): hidden width 2 // 16 == 0, bias-free fc
        # -> squeeze-excite MLP output is exactly 0 -> gate = sigmoid(0) = 0.5.
        att = cj * jax.nn.sigmoid(jnp.zeros((), jnp.float32))
        outs.append(gj * att)
    out = jnp.concatenate(outs, axis=-1)
    return jnp.transpose(out, (0, 3, 1, 2))


# --------------------------------- main ---------------------------------------

if __name__ == "__main__":
    B, CIN, COUT, H, W = 2, 4, 8, 16, 16

    key = jax.random.PRNGKey(0)
    k_par, k_x = jax.random.split(key)
    raw = init_raw_params(k_par, CIN, COUT)
    packed = pack_params(raw, COUT, W)
    x = jax.random.normal(k_x, (B, CIN, H, W), jnp.float32)

    fwd = jax.jit(tf_conv_block_forward)
    out = fwd(packed, x)
    jax.block_until_ready(out)
    assert out.shape == (B, COUT, H, W), out.shape

    ref = jax.jit(tf_conv_block_reference)(raw, x)
    jax.block_until_ready(ref)
    if not bool(jnp.allclose(out, ref, rtol=5e-2, atol=5e-2)):
        err = float(jnp.max(jnp.abs(out - ref)))
        raise AssertionError(f"Pallas TFConvBlock mismatch vs XLA reference "
                             f"(max abs err {err:.3e})")

    print("KERNEL_OK")
</pallas_src>

<mosaic_0001>
module attributes {stable_mosaic.version = 11 : i64} {
  func.func @_tf_conv_block_kernel(%arg0: i32, %arg1: memref<16x128xf32, #tpu.memory_space<vmem>>, %arg2: memref<27x128x128xbf16, #tpu.memory_space<vmem>>, %arg3: memref<7x128xf32, #tpu.memory_space<vmem>>, %arg4: memref<16x128xf32, #tpu.memory_space<vmem>>, %arg5: memref<24x128xf32, #tpu.memory_space<vmem>>) attributes {dimension_semantics = [#tpu.dimension_semantics<parallel>], iteration_bounds = array<i64: 2>, scalar_prefetch = 0 : i64, scratch_operands = 1 : i64, tpu.core_type = #tpu.core_type<tc>, window_params = [{transform_indices = @transform_0, window_bounds = array<i64: 16, 128>}, {pipeline_mode = #tpu.pipeline_mode<synchronous>, transform_indices = @transform_1, window_bounds = array<i64: 27, 128, 128>}, {pipeline_mode = #tpu.pipeline_mode<synchronous>, transform_indices = @transform_2, window_bounds = array<i64: 7, 128>}, {transform_indices = @transform_3, window_bounds = array<i64: 16, 128>}]} {
    %cst = arith.constant 0.000000e+00 : f32
    %0 = vector.broadcast %cst : f32 to vector<4x128xf32>
    %c0 = arith.constant 0 : index
    %c0_0 = arith.constant 0 : index
    %1 = vector.load %arg5[%c0, %c0_0] : memref<24x128xf32, #tpu.memory_space<vmem>>, vector<4x128xf32>
    tpu.vector_store %arg5[%c0, %c0_0], %0 {strides = array<i32>} : memref<24x128xf32, #tpu.memory_space<vmem>>, vector<4x128xf32>,
    %cst_1 = arith.constant 0.000000e+00 : f32
    %2 = vector.broadcast %cst_1 : f32 to vector<4x128xf32>
    %c20 = arith.constant 20 : index
    %c0_2 = arith.constant 0 : index
    %3 = vector.load %arg5[%c20, %c0_2] : memref<24x128xf32, #tpu.memory_space<vmem>>, vector<4x128xf32>
    tpu.vector_store %arg5[%c20, %c0_2], %2 {strides = array<i32>} : memref<24x128xf32, #tpu.memory_space<vmem>>, vector<4x128xf32>,
    %c0_3 = arith.constant 0 : index
    %c0_4 = arith.constant 0 : index
    %4 = vector.load %arg1[%c0_3, %c0_4] : memref<16x128xf32, #tpu.memory_space<vmem>>, vector<16x128xf32>
    %c4 = arith.constant 4 : index
    %c0_5 = arith.constant 0 : index
    %5 = vector.load %arg5[%c4, %c0_5] : memref<24x128xf32, #tpu.memory_space<vmem>>, vector<16x128xf32>
    tpu.vector_store %arg5[%c4, %c0_5], %4 {strides = array<i32>} : memref<24x128xf32, #tpu.memory_space<vmem>>, vector<16x128xf32>,
    %c0_6 = arith.constant 0 : index
    %c0_7 = arith.constant 0 : index
    %6 = vector.load %arg3[%c0_6, %c0_7] : memref<7x128xf32, #tpu.memory_space<vmem>>, vector<1x128xf32>
    %7 = vector.shape_cast %6 : vector<1x128xf32> to vector<1x128xf32>
    %8 = vector.broadcast %7 : vector<1x128xf32> to vector<16x128xf32>
    %c2 = arith.constant 2 : index
    %c0_8 = arith.constant 0 : index
    %9 = vector.load %arg5[%c2, %c0_8] : memref<24x128xf32, #tpu.memory_space<vmem>>, vector<16x128xf32>
    %10 = arith.truncf %9 : vector<16x128xf32> to vector<16x128xbf16>
    %c0_9 = arith.constant 0 : index
    %c0_10 = arith.constant 0 : index
    %c0_11 = arith.constant 0 : index
    %11 = vector.load %arg2[%c0_9, %c0_10, %c0_11] : memref<27x128x128xbf16, #tpu.memory_space<vmem>>, vector<1x128x128xbf16>
    %12 = vector.shape_cast %11 : vector<1x128x128xbf16> to vector<128x128xbf16>
    %cst_12 = arith.constant dense<0.000000e+00> : vector<16x128xf32>
    %13 = tpu.matmul %10, %12, %cst_12 {dimension_numbers = #tpu.dot_dimension_numbers<[1], [0], [0], [1], [0, 0, 1, 1], [], []>} : vector<16x128xbf16>, vector<128x128xbf16>, vector<16x128xf32> -> vector<16x128xf32>
    %14 = arith.addf %8, %13 : vector<16x128xf32>
    %c3 = arith.constant 3 : index
    %c0_13 = arith.constant 0 : index
    %15 = vector.load %arg5[%c3, %c0_13] : memref<24x128xf32, #tpu.memory_space<vmem>>, vector<16x128xf32>
    %16 = arith.truncf %15 : vector<16x128xf32> to vector<16x128xbf16>
    %c1 = arith.constant 1 : index
    %c0_14 = arith.constant 0 : index
    %c0_15 = arith.constant 0 : index
    %17 = vector.load %arg2[%c1, %c0_14, %c0_15] : memref<27x128x128xbf16, #tpu.memory_space<vmem>>, vector<1x128x128xbf16>
    %18 = vector.shape_cast %17 : vector<1x128x128xbf16> to vector<128x128xbf16>
    %cst_16 = arith.constant dense<0.000000e+00> : vector<16x128xf32>
    %19 = tpu.matmul %16, %18, %cst_16 {dimension_numbers = #tpu.dot_dimension_numbers<[1], [0], [0], [1], [0, 0, 1, 1], [], []>} : vector<16x128xbf16>, vector<128x128xbf16>, vector<16x128xf32> -> vector<16x128xf32>
    %20 = arith.addf %14, %19 : vector<16x128xf32>
    %c4_17 = arith.constant 4 : index
    %c0_18 = arith.constant 0 : index
    %21 = vector.load %arg5[%c4_17, %c0_18] : memref<24x128xf32, #tpu.memory_space<vmem>>, vector<16x128xf32>
    %22 = arith.truncf %21 : vector<16x128xf32> to vector<16x128xbf16>
    %c2_19 = arith.constant 2 : index
    %c0_20 = arith.constant 0 : index
    %c0_21 = arith.constant 0 : index
    %23 = vector.load %arg2[%c2_19, %c0_20, %c0_21] : memref<27x128x128xbf16, #tpu.memory_space<vmem>>, vector<1x128x128xbf16>
    %24 = vector.shape_cast %23 : vector<1x128x128xbf16> to vector<128x128xbf16>
    %cst_22 = arith.constant dense<0.000000e+00> : vector<16x128xf32>
    %25 = tpu.matmul %22, %24, %cst_22 {dimension_numbers = #tpu.dot_dimension_numbers<[1], [0], [0], [1], [0, 0, 1, 1], [], []>} : vector<16x128xbf16>, vector<128x128xbf16>, vector<16x128xf32> -> vector<16x128xf32>
    %26 = arith.addf %20, %25 : vector<16x128xf32>
    %c5 = arith.constant 5 : index
    %c0_23 = arith.constant 0 : index
    %27 = vector.load %arg5[%c5, %c0_23] : memref<24x128xf32, #tpu.memory_space<vmem>>, vector<16x128xf32>
    %28 = arith.truncf %27 : vector<16x128xf32> to vector<16x128xbf16>
    %c3_24 = arith.constant 3 : index
    %c0_25 = arith.constant 0 : index
    %c0_26 = arith.constant 0 : index
    %29 = vector.load %arg2[%c3_24, %c0_25, %c0_26] : memref<27x128x128xbf16, #tpu.memory_space<vmem>>, vector<1x128x128xbf16>
    %30 = vector.shape_cast %29 : vector<1x128x128xbf16> to vector<128x128xbf16>
    %cst_27 = arith.constant dense<0.000000e+00> : vector<16x128xf32>
    %31 = tpu.matmul %28, %30, %cst_27 {dimension_numbers = #tpu.dot_dimension_numbers<[1], [0], [0], [1], [0, 0, 1, 1], [], []>} : vector<16x128xbf16>, vector<128x128xbf16>, vector<16x128xf32> -> vector<16x128xf32>
    %32 = arith.addf %26, %31 : vector<16x128xf32>
    %c6 = arith.constant 6 : index
    %c0_28 = arith.constant 0 : index
    %33 = vector.load %arg5[%c6, %c0_28] : memref<24x128xf32, #tpu.memory_space<vmem>>, vector<16x128xf32>
    %34 = arith.truncf %33 : vector<16x128xf32> to vector<16x128xbf16>
    %c4_29 = arith.constant 4 : index
    %c0_30 = arith.constant 0 : index
    %c0_31 = arith.constant 0 : index
    %35 = vector.load %arg2[%c4_29, %c0_30, %c0_31] : memref<27x128x128xbf16, #tpu.memory_space<vmem>>, vector<1x128x128xbf16>
    %36 = vector.shape_cast %35 : vector<1x128x128xbf16> to vector<128x128xbf16>
    %cst_32 = arith.constant dense<0.000000e+00> : vector<16x128xf32>
    %37 = tpu.matmul %34, %36, %cst_32 {dimension_numbers = #tpu.dot_dimension_numbers<[1], [0], [0], [1], [0, 0, 1, 1], [], []>} : vector<16x128xbf16>, vector<128x128xbf16>, vector<16x128xf32> -> vector<16x128xf32>
    %38 = arith.addf %32, %37 : vector<16x128xf32>
    %c4_33 = arith.constant 4 : index
    %c0_34 = arith.constant 0 : index
    %39 = vector.load %arg5[%c4_33, %c0_34] : memref<24x128xf32, #tpu.memory_space<vmem>>, vector<16x128xf32>
    tpu.vector_store %arg5[%c4_33, %c0_34], %38 {strides = array<i32>} : memref<24x128xf32, #tpu.memory_space<vmem>>, vector<16x128xf32>,
    %c1_35 = arith.constant 1 : index
    %c0_36 = arith.constant 0 : index
    %40 = vector.load %arg3[%c1_35, %c0_36] : memref<7x128xf32, #tpu.memory_space<vmem>>, vector<1x128xf32>
    %41 = vector.shape_cast %40 : vector<1x128xf32> to vector<1x128xf32>
    %42 = vector.broadcast %41 : vector<1x128xf32> to vector<16x128xf32>
    %c3_37 = arith.constant 3 : index
    %c0_38 = arith.constant 0 : index
    %43 = vector.load %arg5[%c3_37, %c0_38] : memref<24x128xf32, #tpu.memory_space<vmem>>, vector<16x128xf32>
    %44 = arith.truncf %43 : vector<16x128xf32> to vector<16x128xbf16>
    %c5_39 = arith.constant 5 : index
    %c0_40 = arith.constant 0 : index
    %c0_41 = arith.constant 0 : index
    %45 = vector.load %arg2[%c5_39, %c0_40, %c0_41] : memref<27x128x128xbf16, #tpu.memory_space<vmem>>, vector<1x128x128xbf16>
    %46 = vector.shape_cast %45 : vector<1x128x128xbf16> to vector<128x128xbf16>
    %cst_42 = arith.constant dense<0.000000e+00> : vector<16x128xf32>
    %47 = tpu.matmul %44, %46, %cst_42 {dimension_numbers = #tpu.dot_dimension_numbers<[1], [0], [0], [1], [0, 0, 1, 1], [], []>} : vector<16x128xbf16>, vector<128x128xbf16>, vector<16x128xf32> -> vector<16x128xf32>
    %48 = arith.addf %42, %47 : vector<16x128xf32>
    %c4_43 = arith.constant 4 : index
    %c0_44 = arith.constant 0 : index
    %49 = vector.load %arg5[%c4_43, %c0_44] : memref<24x128xf32, #tpu.memory_space<vmem>>, vector<16x128xf32>
    %50 = arith.truncf %49 : vector<16x128xf32> to vector<16x128xbf16>
    %c6_45 = arith.constant 6 : index
    %c0_46 = arith.constant 0 : index
    %c0_47 = arith.constant 0 : index
    %51 = vector.load %arg2[%c6_45, %c0_46, %c0_47] : memref<27x128x128xbf16, #tpu.memory_space<vmem>>, vector<1x128x128xbf16>
    %52 = vector.shape_cast %51 : vector<1x128x128xbf16> to vector<128x128xbf16>
    %cst_48 = arith.constant dense<0.000000e+00> : vector<16x128xf32>
    %53 = tpu.matmul %50, %52, %cst_48 {dimension_numbers = #tpu.dot_dimension_numbers<[1], [0], [0], [1], [0, 0, 1, 1], [], []>} : vector<16x128xbf16>, vector<128x128xbf16>, vector<16x128xf32> -> vector<16x128xf32>
    %54 = arith.addf %48, %53 : vector<16x128xf32>
    %c5_49 = arith.constant 5 : index
    %c0_50 = arith.constant 0 : index
    %55 = vector.load %arg5[%c5_49, %c0_50] : memref<24x128xf32, #tpu.memory_space<vmem>>, vector<16x128xf32>
    %56 = arith.truncf %55 : vector<16x128xf32> to vector<16x128xbf16>
    %c7 = arith.constant 7 : index
    %c0_51 = arith.constant 0 : index
    %c0_52 = arith.constant 0 : index
    %57 = vector.load %arg2[%c7, %c0_51, %c0_52] : memref<27x128x128xbf16, #tpu.memory_space<vmem>>, vector<1x128x128xbf16>
    %58 = vector.shape_cast %57 : vector<1x128x128xbf16> to vector<128x128xbf16>
    %cst_53 = arith.constant dense<0.000000e+00> : vector<16x128xf32>
    %59 = tpu.matmul %56, %58, %cst_53 {dimension_numbers = #tpu.dot_dimension_numbers<[1], [0], [0], [1], [0, 0, 1, 1], [], []>} : vector<16x128xbf16>, vector<128x128xbf16>, vector<16x128xf32> -> vector<16x128xf32>
    %60 = arith.addf %54, %59 : vector<16x128xf32>
    %c4_54 = arith.constant 4 : index
    %c0_55 = arith.constant 0 : index
    %61 = vector.load %arg5[%c4_54, %c0_55] : memref<24x128xf32, #tpu.memory_space<vmem>>, vector<16x128xf32>
    tpu.vector_store %arg5[%c4_54, %c0_55], %60 {strides = array<i32>} : memref<24x128xf32, #tpu.memory_space<vmem>>, vector<16x128xf32>,
    %c2_56 = arith.constant 2 : index
    %c0_57 = arith.constant 0 : index
    %62 = vector.load %arg3[%c2_56, %c0_57] : memref<7x128xf32, #tpu.memory_space<vmem>>, vector<1x128xf32>
    %63 = vector.shape_cast %62 : vector<1x128xf32> to vector<1x128xf32>
    %64 = vector.broadcast %63 : vector<1x128xf32> to vector<16x128xf32>
    %c3_58 = arith.constant 3 : index
    %c0_59 = arith.constant 0 : index
    %65 = vector.load %arg5[%c3_58, %c0_59] : memref<24x128xf32, #tpu.memory_space<vmem>>, vector<16x128xf32>
    %66 = arith.truncf %65 : vector<16x128xf32> to vector<16x128xbf16>
    %c8 = arith.constant 8 : index
    %c0_60 = arith.constant 0 : index
    %c0_61 = arith.constant 0 : index
    %67 = vector.load %arg2[%c8, %c0_60, %c0_61] : memref<27x128x128xbf16, #tpu.memory_space<vmem>>, vector<1x128x128xbf16>
    %68 = vector.shape_cast %67 : vector<1x128x128xbf16> to vector<128x128xbf16>
    %cst_62 = arith.constant dense<0.000000e+00> : vector<16x128xf32>
    %69 = tpu.matmul %66, %68, %cst_62 {dimension_numbers = #tpu.dot_dimension_numbers<[1], [0], [0], [1], [0, 0, 1, 1], [], []>} : vector<16x128xbf16>, vector<128x128xbf16>, vector<16x128xf32> -> vector<16x128xf32>
    %70 = arith.addf %64, %69 : vector<16x128xf32>
    %c4_63 = arith.constant 4 : index
    %c0_64 = arith.constant 0 : index
    %71 = vector.load %arg5[%c4_63, %c0_64] : memref<24x128xf32, #tpu.memory_space<vmem>>, vector<16x128xf32>
    %72 = arith.truncf %71 : vector<16x128xf32> to vector<16x128xbf16>
    %c9 = arith.constant 9 : index
    %c0_65 = arith.constant 0 : index
    %c0_66 = arith.constant 0 : index
    %73 = vector.load %arg2[%c9, %c0_65, %c0_66] : memref<27x128x128xbf16, #tpu.memory_space<vmem>>, vector<1x128x128xbf16>
    %74 = vector.shape_cast %73 : vector<1x128x128xbf16> to vector<128x128xbf16>
    %cst_67 = arith.constant dense<0.000000e+00> : vector<16x128xf32>
    %75 = tpu.matmul %72, %74, %cst_67 {dimension_numbers = #tpu.dot_dimension_numbers<[1], [0], [0], [1], [0, 0, 1, 1], [], []>} : vector<16x128xbf16>, vector<128x128xbf16>, vector<16x128xf32> -> vector<16x128xf32>
    %76 = arith.addf %70, %75 : vector<16x128xf32>
    %c5_68 = arith.constant 5 : index
    %c0_69 = arith.constant 0 : index
    %77 = vector.load %arg5[%c5_68, %c0_69] : memref<24x128xf32, #tpu.memory_space<vmem>>, vector<16x128xf32>
    %78 = arith.truncf %77 : vector<16x128xf32> to vector<16x128xbf16>
    %c10 = arith.constant 10 : index
    %c0_70 = arith.constant 0 : index
    %c0_71 = arith.constant 0 : index
    %79 = vector.load %arg2[%c10, %c0_70, %c0_71] : memref<27x128x128xbf16, #tpu.memory_space<vmem>>, vector<1x128x128xbf16>
    %80 = vector.shape_cast %79 : vector<1x128x128xbf16> to vector<128x128xbf16>
    %cst_72 = arith.constant dense<0.000000e+00> : vector<16x128xf32>
    %81 = tpu.matmul %78, %80, %cst_72 {dimension_numbers = #tpu.dot_dimension_numbers<[1], [0], [0], [1], [0, 0, 1, 1], [], []>} : vector<16x128xbf16>, vector<128x128xbf16>, vector<16x128xf32> -> vector<16x128xf32>
    %82 = arith.addf %76, %81 : vector<16x128xf32>
    %cst_73 = arith.constant 0.000000e+00 : f32
    %83 = vector.broadcast %cst_73 : f32 to vector<16x128xf32>
    %84 = arith.maximumf %82, %83 : vector<16x128xf32>
    %c4_74 = arith.constant 4 : index
    %c0_75 = arith.constant 0 : index
    %85 = vector.load %arg5[%c4_74, %c0_75] : memref<24x128xf32, #tpu.memory_space<vmem>>, vector<16x128xf32>
    tpu.vector_store %arg5[%c4_74, %c0_75], %84 {strides = array<i32>} : memref<24x128xf32, #tpu.memory_space<vmem>>, vector<16x128xf32>,
    %c3_76 = arith.constant 3 : index
    %c0_77 = arith.constant 0 : index
    %86 = vector.load %arg3[%c3_76, %c0_77] : memref<7x128xf32, #tpu.memory_space<vmem>>, vector<1x128xf32>
    %87 = vector.shape_cast %86 : vector<1x128xf32> to vector<1x128xf32>
    %88 = vector.broadcast %87 : vector<1x128xf32> to vector<16x128xf32>
    %c3_78 = arith.constant 3 : index
    %c0_79 = arith.constant 0 : index
    %89 = vector.load %arg5[%c3_78, %c0_79] : memref<24x128xf32, #tpu.memory_space<vmem>>, vector<16x128xf32>
    %90 = arith.truncf %89 : vector<16x128xf32> to vector<16x128xbf16>
    %c11 = arith.constant 11 : index
    %c0_80 = arith.constant 0 : index
    %c0_81 = arith.constant 0 : index
    %91 = vector.load %arg2[%c11, %c0_80, %c0_81] : memref<27x128x128xbf16, #tpu.memory_space<vmem>>, vector<1x128x128xbf16>
    %92 = vector.shape_cast %91 : vector<1x128x128xbf16> to vector<128x128xbf16>
    %cst_82 = arith.constant dense<0.000000e+00> : vector<16x128xf32>
    %93 = tpu.matmul %90, %92, %cst_82 {dimension_numbers = #tpu.dot_dimension_numbers<[1], [0], [0], [1], [0, 0, 1, 1], [], []>} : vector<16x128xbf16>, vector<128x128xbf16>, vector<16x128xf32> -> vector<16x128xf32>
    %94 = arith.addf %88, %93 : vector<16x128xf32>
    %c4_83 = arith.constant 4 : index
    %c0_84 = arith.constant 0 : index
    %95 = vector.load %arg5[%c4_83, %c0_84] : memref<24x128xf32, #tpu.memory_space<vmem>>, vector<16x128xf32>
    %96 = arith.truncf %95 : vector<16x128xf32> to vector<16x128xbf16>
    %c12 = arith.constant 12 : index
    %c0_85 = arith.constant 0 : index
    %c0_86 = arith.constant 0 : index
    %97 = vector.load %arg2[%c12, %c0_85, %c0_86] : memref<27x128x128xbf16, #tpu.memory_space<vmem>>, vector<1x128x128xbf16>
    %98 = vector.shape_cast %97 : vector<1x128x128xbf16> to vector<128x128xbf16>
    %cst_87 = arith.constant dense<0.000000e+00> : vector<16x128xf32>
    %99 = tpu.matmul %96, %98, %cst_87 {dimension_numbers = #tpu.dot_dimension_numbers<[1], [0], [0], [1], [0, 0, 1, 1], [], []>} : vector<16x128xbf16>, vector<128x128xbf16>, vector<16x128xf32> -> vector<16x128xf32>
    %100 = arith.addf %94, %99 : vector<16x128xf32>
    %c5_88 = arith.constant 5 : index
    %c0_89 = arith.constant 0 : index
    %101 = vector.load %arg5[%c5_88, %c0_89] : memref<24x128xf32, #tpu.memory_space<vmem>>, vector<16x128xf32>
    %102 = arith.truncf %101 : vector<16x128xf32> to vector<16x128xbf16>
    %c13 = arith.constant 13 : index
    %c0_90 = arith.constant 0 : index
    %c0_91 = arith.constant 0 : index
    %103 = vector.load %arg2[%c13, %c0_90, %c0_91] : memref<27x128x128xbf16, #tpu.memory_space<vmem>>, vector<1x128x128xbf16>
    %104 = vector.shape_cast %103 : vector<1x128x128xbf16> to vector<128x128xbf16>
    %cst_92 = arith.constant dense<0.000000e+00> : vector<16x128xf32>
    %105 = tpu.matmul %102, %104, %cst_92 {dimension_numbers = #tpu.dot_dimension_numbers<[1], [0], [0], [1], [0, 0, 1, 1], [], []>} : vector<16x128xbf16>, vector<128x128xbf16>, vector<16x128xf32> -> vector<16x128xf32>
    %106 = arith.addf %100, %105 : vector<16x128xf32>
    %c4_93 = arith.constant 4 : index
    %c0_94 = arith.constant 0 : index
    %107 = vector.load %arg5[%c4_93, %c0_94] : memref<24x128xf32, #tpu.memory_space<vmem>>, vector<16x128xf32>
    tpu.vector_store %arg5[%c4_93, %c0_94], %106 {strides = array<i32>} : memref<24x128xf32, #tpu.memory_space<vmem>>, vector<16x128xf32>,
    %c4_95 = arith.constant 4 : index
    %c0_96 = arith.constant 0 : index
    %108 = vector.load %arg3[%c4_95, %c0_96] : memref<7x128xf32, #tpu.memory_space<vmem>>, vector<1x128xf32>
    %109 = vector.shape_cast %108 : vector<1x128xf32> to vector<1x128xf32>
    %110 = vector.broadcast %109 : vector<1x128xf32> to vector<16x128xf32>
    %c3_97 = arith.constant 3 : index
    %c0_98 = arith.constant 0 : index
    %111 = vector.load %arg5[%c3_97, %c0_98] : memref<24x128xf32, #tpu.memory_space<vmem>>, vector<16x128xf32>
    %112 = arith.truncf %111 : vector<16x128xf32> to vector<16x128xbf16>
    %c14 = arith.constant 14 : index
    %c0_99 = arith.constant 0 : index
    %c0_100 = arith.constant 0 : index
    %113 = vector.load %arg2[%c14, %c0_99, %c0_100] : memref<27x128x128xbf16, #tpu.memory_space<vmem>>, vector<1x128x128xbf16>
    %114 = vector.shape_cast %113 : vector<1x128x128xbf16> to vector<128x128xbf16>
    %cst_101 = arith.constant dense<0.000000e+00> : vector<16x128xf32>
    %115 = tpu.matmul %112, %114, %cst_101 {dimension_numbers = #tpu.dot_dimension_numbers<[1], [0], [0], [1], [0, 0, 1, 1], [], []>} : vector<16x128xbf16>, vector<128x128xbf16>, vector<16x128xf32> -> vector<16x128xf32>
    %116 = arith.addf %110, %115 : vector<16x128xf32>
    %c4_102 = arith.constant 4 : index
    %c0_103 = arith.constant 0 : index
    %117 = vector.load %arg5[%c4_102, %c0_103] : memref<24x128xf32, #tpu.memory_space<vmem>>, vector<16x128xf32>
    %118 = arith.truncf %117 : vector<16x128xf32> to vector<16x128xbf16>
    %c15 = arith.constant 15 : index
    %c0_104 = arith.constant 0 : index
    %c0_105 = arith.constant 0 : index
    %119 = vector.load %arg2[%c15, %c0_104, %c0_105] : memref<27x128x128xbf16, #tpu.memory_space<vmem>>, vector<1x128x128xbf16>
    %120 = vector.shape_cast %119 : vector<1x128x128xbf16> to vector<128x128xbf16>
    %cst_106 = arith.constant dense<0.000000e+00> : vector<16x128xf32>
    %121 = tpu.matmul %118, %120, %cst_106 {dimension_numbers = #tpu.dot_dimension_numbers<[1], [0], [0], [1], [0, 0, 1, 1], [], []>} : vector<16x128xbf16>, vector<128x128xbf16>, vector<16x128xf32> -> vector<16x128xf32>
    %122 = arith.addf %116, %121 : vector<16x128xf32>
    %c5_107 = arith.constant 5 : index
    %c0_108 = arith.constant 0 : index
    %123 = vector.load %arg5[%c5_107, %c0_108] : memref<24x128xf32, #tpu.memory_space<vmem>>, vector<16x128xf32>
    %124 = arith.truncf %123 : vector<16x128xf32> to vector<16x128xbf16>
    %c16 = arith.constant 16 : index
    %c0_109 = arith.constant 0 : index
    %c0_110 = arith.constant 0 : index
    %125 = vector.load %arg2[%c16, %c0_109, %c0_110] : memref<27x128x128xbf16, #tpu.memory_space<vmem>>, vector<1x128x128xbf16>
    %126 = vector.shape_cast %125 : vector<1x128x128xbf16> to vector<128x128xbf16>
    %cst_111 = arith.constant dense<0.000000e+00> : vector<16x128xf32>
    %127 = tpu.matmul %124, %126, %cst_111 {dimension_numbers = #tpu.dot_dimension_numbers<[1], [0], [0], [1], [0, 0, 1, 1], [], []>} : vector<16x128xbf16>, vector<128x128xbf16>, vector<16x128xf32> -> vector<16x128xf32>
    %128 = arith.addf %122, %127 : vector<16x128xf32>
    %cst_112 = arith.constant 0.000000e+00 : f32
    %129 = vector.broadcast %cst_112 : f32 to vector<16x128xf32>
    %130 = arith.maximumf %128, %129 : vector<16x128xf32>
    %c5_113 = arith.constant 5 : index
    %c0_114 = arith.constant 0 : index
    %131 = vector.load %arg3[%c5_113, %c0_114] : memref<7x128xf32, #tpu.memory_space<vmem>>, vector<1x128xf32>
    %132 = vector.shape_cast %131 : vector<1x128xf32> to vector<1x128xf32>
    %133 = vector.broadcast %132 : vector<1x128xf32> to vector<16x128xf32>
    %134 = arith.truncf %130 : vector<16x128xf32> to vector<16x128xbf16>
    %c17 = arith.constant 17 : index
    %c0_115 = arith.constant 0 : index
    %c0_116 = arith.constant 0 : index
    %135 = vector.load %arg2[%c17, %c0_115, %c0_116] : memref<27x128x128xbf16, #tpu.memory_space<vmem>>, vector<1x128x128xbf16>
    %136 = vector.shape_cast %135 : vector<1x128x128xbf16> to vector<128x128xbf16>
    %cst_117 = arith.constant dense<0.000000e+00> : vector<16x128xf32>
    %137 = tpu.matmul %134, %136, %cst_117 {dimension_numbers = #tpu.dot_dimension_numbers<[1], [0], [0], [1], [0, 0, 1, 1], [], []>} : vector<16x128xbf16>, vector<128x128xbf16>, vector<16x128xf32> -> vector<16x128xf32>
    %138 = arith.addf %133, %137 : vector<16x128xf32>
    %c4_118 = arith.constant 4 : index
    %c0_119 = arith.constant 0 : index
    %139 = vector.load %arg5[%c4_118, %c0_119] : memref<24x128xf32, #tpu.memory_space<vmem>>, vector<16x128xf32>
    tpu.vector_store %arg5[%c4_118, %c0_119], %138 {strides = array<i32>} : memref<24x128xf32, #tpu.memory_space<vmem>>, vector<16x128xf32>,
    %c6_120 = arith.constant 6 : index
    %c0_121 = arith.constant 0 : index
    %140 = vector.load %arg3[%c6_120, %c0_121] : memref<7x128xf32, #tpu.memory_space<vmem>>, vector<1x128xf32>
    %141 = vector.shape_cast %140 : vector<1x128xf32> to vector<1x128xf32>
    %142 = vector.broadcast %141 : vector<1x128xf32> to vector<16x128xf32>
    %c0_122 = arith.constant 0 : index
    %c0_123 = arith.constant 0 : index
    %143 = vector.load %arg5[%c0_122, %c0_123] : memref<24x128xf32, #tpu.memory_space<vmem>>, vector<16x128xf32>
    %144 = arith.truncf %143 : vector<16x128xf32> to vector<16x128xbf16>
    %c18 = arith.constant 18 : index
    %c0_124 = arith.constant 0 : index
    %c0_125 = arith.constant 0 : index
    %145 = vector.load %arg2[%c18, %c0_124, %c0_125] : memref<27x128x128xbf16, #tpu.memory_space<vmem>>, vector<1x128x128xbf16>
    %146 = vector.shape_cast %145 : vector<1x128x128xbf16> to vector<128x128xbf16>
    %cst_126 = arith.constant dense<0.000000e+00> : vector<16x128xf32>
    %147 = tpu.matmul %144, %146, %cst_126 {dimension_numbers = #tpu.dot_dimension_numbers<[1], [0], [0], [1], [0, 0, 1, 1], [], []>} : vector<16x128xbf16>, vector<128x128xbf16>, vector<16x128xf32> -> vector<16x128xf32>
    %148 = arith.addf %142, %147 : vector<16x128xf32>
    %c1_127 = arith.constant 1 : index
    %c0_128 = arith.constant 0 : index
    %149 = vector.load %arg5[%c1_127, %c0_128] : memref<24x128xf32, #tpu.memory_space<vmem>>, vector<16x128xf32>
    %150 = arith.truncf %149 : vector<16x128xf32> to vector<16x128xbf16>
    %c19 = arith.constant 19 : index
    %c0_129 = arith.constant 0 : index
    %c0_130 = arith.constant 0 : index
    %151 = vector.load %arg2[%c19, %c0_129, %c0_130] : memref<27x128x128xbf16, #tpu.memory_space<vmem>>, vector<1x128x128xbf16>
    %152 = vector.shape_cast %151 : vector<1x128x128xbf16> to vector<128x128xbf16>
    %cst_131 = arith.constant dense<0.000000e+00> : vector<16x128xf32>
    %153 = tpu.matmul %150, %152, %cst_131 {dimension_numbers = #tpu.dot_dimension_numbers<[1], [0], [0], [1], [0, 0, 1, 1], [], []>} : vector<16x128xbf16>, vector<128x128xbf16>, vector<16x128xf32> -> vector<16x128xf32>
    %154 = arith.addf %148, %153 : vector<16x128xf32>
    %c2_132 = arith.constant 2 : index
    %c0_133 = arith.constant 0 : index
    %155 = vector.load %arg5[%c2_132, %c0_133] : memref<24x128xf32, #tpu.memory_space<vmem>>, vector<16x128xf32>
    %156 = arith.truncf %155 : vector<16x128xf32> to vector<16x128xbf16>
    %c20_134 = arith.constant 20 : index
    %c0_135 = arith.constant 0 : index
    %c0_136 = arith.constant 0 : index
    %157 = vector.load %arg2[%c20_134, %c0_135, %c0_136] : memref<27x128x128xbf16, #tpu.memory_space<vmem>>, vector<1x128x128xbf16>
    %158 = vector.shape_cast %157 : vector<1x128x128xbf16> to vector<128x128xbf16>
    %cst_137 = arith.constant dense<0.000000e+00> : vector<16x128xf32>
    %159 = tpu.matmul %156, %158, %cst_137 {dimension_numbers = #tpu.dot_dimension_numbers<[1], [0], [0], [1], [0, 0, 1, 1], [], []>} : vector<16x128xbf16>, vector<128x128xbf16>, vector<16x128xf32> -> vector<16x128xf32>
    %160 = arith.addf %154, %159 : vector<16x128xf32>
    %c3_138 = arith.constant 3 : index
    %c0_139 = arith.constant 0 : index
    %161 = vector.load %arg5[%c3_138, %c0_139] : memref<24x128xf32, #tpu.memory_space<vmem>>, vector<16x128xf32>
    %162 = arith.truncf %161 : vector<16x128xf32> to vector<16x128xbf16>
    %c21 = arith.constant 21 : index
    %c0_140 = arith.constant 0 : index
    %c0_141 = arith.constant 0 : index
    %163 = vector.load %arg2[%c21, %c0_140, %c0_141] : memref<27x128x128xbf16, #tpu.memory_space<vmem>>, vector<1x128x128xbf16>
    %164 = vector.shape_cast %163 : vector<1x128x128xbf16> to vector<128x128xbf16>
    %cst_142 = arith.constant dense<0.000000e+00> : vector<16x128xf32>
    %165 = tpu.matmul %162, %164, %cst_142 {dimension_numbers = #tpu.dot_dimension_numbers<[1], [0], [0], [1], [0, 0, 1, 1], [], []>} : vector<16x128xbf16>, vector<128x128xbf16>, vector<16x128xf32> -> vector<16x128xf32>
    %166 = arith.addf %160, %165 : vector<16x128xf32>
    %c4_143 = arith.constant 4 : index
    %c0_144 = arith.constant 0 : index
    %167 = vector.load %arg5[%c4_143, %c0_144] : memref<24x128xf32, #tpu.memory_space<vmem>>, vector<16x128xf32>
    %168 = arith.truncf %167 : vector<16x128xf32> to vector<16x128xbf16>
    %c22 = arith.constant 22 : index
    %c0_145 = arith.constant 0 : index
    %c0_146 = arith.constant 0 : index
    %169 = vector.load %arg2[%c22, %c0_145, %c0_146] : memref<27x128x128xbf16, #tpu.memory_space<vmem>>, vector<1x128x128xbf16>
    %170 = vector.shape_cast %169 : vector<1x128x128xbf16> to vector<128x128xbf16>
    %cst_147 = arith.constant dense<0.000000e+00> : vector<16x128xf32>
    %171 = tpu.matmul %168, %170, %cst_147 {dimension_numbers = #tpu.dot_dimension_numbers<[1], [0], [0], [1], [0, 0, 1, 1], [], []>} : vector<16x128xbf16>, vector<128x128xbf16>, vector<16x128xf32> -> vector<16x128xf32>
    %172 = arith.addf %166, %171 : vector<16x128xf32>
    %c5_148 = arith.constant 5 : index
    %c0_149 = arith.constant 0 : index
    %173 = vector.load %arg5[%c5_148, %c0_149] : memref<24x128xf32, #tpu.memory_space<vmem>>, vector<16x128xf32>
    %174 = arith.truncf %173 : vector<16x128xf32> to vector<16x128xbf16>
    %c23 = arith.constant 23 : index
    %c0_150 = arith.constant 0 : index
    %c0_151 = arith.constant 0 : index
    %175 = vector.load %arg2[%c23, %c0_150, %c0_151] : memref<27x128x128xbf16, #tpu.memory_space<vmem>>, vector<1x128x128xbf16>
    %176 = vector.shape_cast %175 : vector<1x128x128xbf16> to vector<128x128xbf16>
    %cst_152 = arith.constant dense<0.000000e+00> : vector<16x128xf32>
    %177 = tpu.matmul %174, %176, %cst_152 {dimension_numbers = #tpu.dot_dimension_numbers<[1], [0], [0], [1], [0, 0, 1, 1], [], []>} : vector<16x128xbf16>, vector<128x128xbf16>, vector<16x128xf32> -> vector<16x128xf32>
    %178 = arith.addf %172, %177 : vector<16x128xf32>
    %c6_153 = arith.constant 6 : index
    %c0_154 = arith.constant 0 : index
    %179 = vector.load %arg5[%c6_153, %c0_154] : memref<24x128xf32, #tpu.memory_space<vmem>>, vector<16x128xf32>
    %180 = arith.truncf %179 : vector<16x128xf32> to vector<16x128xbf16>
    %c24 = arith.constant 24 : index
    %c0_155 = arith.constant 0 : index
    %c0_156 = arith.constant 0 : index
    %181 = vector.load %arg2[%c24, %c0_155, %c0_156] : memref<27x128x128xbf16, #tpu.memory_space<vmem>>, vector<1x128x128xbf16>
    %182 = vector.shape_cast %181 : vector<1x128x128xbf16> to vector<128x128xbf16>
    %cst_157 = arith.constant dense<0.000000e+00> : vector<16x128xf32>
    %183 = tpu.matmul %180, %182, %cst_157 {dimension_numbers = #tpu.dot_dimension_numbers<[1], [0], [0], [1], [0, 0, 1, 1], [], []>} : vector<16x128xbf16>, vector<128x128xbf16>, vector<16x128xf32> -> vector<16x128xf32>
    %184 = arith.addf %178, %183 : vector<16x128xf32>
    %c7_158 = arith.constant 7 : index
    %c0_159 = arith.constant 0 : index
    %185 = vector.load %arg5[%c7_158, %c0_159] : memref<24x128xf32, #tpu.memory_space<vmem>>, vector<16x128xf32>
    %186 = arith.truncf %185 : vector<16x128xf32> to vector<16x128xbf16>
    %c25 = arith.constant 25 : index
    %c0_160 = arith.constant 0 : index
    %c0_161 = arith.constant 0 : index
    %187 = vector.load %arg2[%c25, %c0_160, %c0_161] : memref<27x128x128xbf16, #tpu.memory_space<vmem>>, vector<1x128x128xbf16>
    %188 = vector.shape_cast %187 : vector<1x128x128xbf16> to vector<128x128xbf16>
    %cst_162 = arith.constant dense<0.000000e+00> : vector<16x128xf32>
    %189 = tpu.matmul %186, %188, %cst_162 {dimension_numbers = #tpu.dot_dimension_numbers<[1], [0], [0], [1], [0, 0, 1, 1], [], []>} : vector<16x128xbf16>, vector<128x128xbf16>, vector<16x128xf32> -> vector<16x128xf32>
    %190 = arith.addf %184, %189 : vector<16x128xf32>
    %c8_163 = arith.constant 8 : index
    %c0_164 = arith.constant 0 : index
    %191 = vector.load %arg5[%c8_163, %c0_164] : memref<24x128xf32, #tpu.memory_space<vmem>>, vector<16x128xf32>
    %192 = arith.truncf %191 : vector<16x128xf32> to vector<16x128xbf16>
    %c26 = arith.constant 26 : index
    %c0_165 = arith.constant 0 : index
    %c0_166 = arith.constant 0 : index
    %193 = vector.load %arg2[%c26, %c0_165, %c0_166] : memref<27x128x128xbf16, #tpu.memory_space<vmem>>, vector<1x128x128xbf16>
    %194 = vector.shape_cast %193 : vector<1x128x128xbf16> to vector<128x128xbf16>
    %cst_167 = arith.constant dense<0.000000e+00> : vector<16x128xf32>
    %195 = tpu.matmul %192, %194, %cst_167 {dimension_numbers = #tpu.dot_dimension_numbers<[1], [0], [0], [1], [0, 0, 1, 1], [], []>} : vector<16x128xbf16>, vector<128x128xbf16>, vector<16x128xf32> -> vector<16x128xf32>
    %196 = arith.addf %190, %195 : vector<16x128xf32>
    %197 = arith.mulf %138, %196 : vector<16x128xf32>
    %c0_168 = arith.constant 0 : index
    %c0_169 = arith.constant 0 : index
    %198 = vector.load %arg4[%c0_168, %c0_169] : memref<16x128xf32, #tpu.memory_space<vmem>>, vector<16x128xf32>
    tpu.vector_store %arg4[%c0_168, %c0_169], %197 {strides = array<i32>} : memref<16x128xf32, #tpu.memory_space<vmem>>, vector<16x128xf32>,
    return
  }
  func.func @transform_0(%arg0: i32) -> (i32, i32) {
    %c0_i32 = arith.constant 0 : i32
    %c0_i32_0 = arith.constant 0 : i32
    return %arg0, %c0_i32 : i32, i32
  }
  func.func @transform_1(%arg0: i32) -> (i32, i32, i32) {
    %c0_i32 = arith.constant 0 : i32
    %c0_i32_0 = arith.constant 0 : i32
    %c0_i32_1 = arith.constant 0 : i32
    %c0_i32_2 = arith.constant 0 : i32
    return %c0_i32, %c0_i32_0, %c0_i32_1 : i32, i32, i32
  }
  func.func @transform_2(%arg0: i32) -> (i32, i32) {
    %c0_i32 = arith.constant 0 : i32
    %c0_i32_0 = arith.constant 0 : i32
    %c0_i32_1 = arith.constant 0 : i32
    return %c0_i32, %c0_i32_0 : i32, i32
  }
  func.func @transform_3(%arg0: i32) -> (i32, i32) {
    %c0_i32 = arith.constant 0 : i32
    %c0_i32_0 = arith.constant 0 : i32
    return %arg0, %c0_i32 : i32, i32
  }
}

</mosaic_0001>

<bundles_post_ra>
// kernel: tf_conv_block_forward.1
= control target key start
LH: loop header
LB: loop body
LE: loop exit
PB: predicated region body
PF: predicated region fallthrough
CT: control target
= control target key end

     0   :  { %8 = vsyncpa [#allocation4], 0  ;;  %s4632_s12 = smov 0   ;;  %s4996_s0 = inlined_call_operand.vmem [shape: f32[32,128], index: 0, kind: input, shape index: {}]   ;;  %s4997_s1 = inlined_call_operand.hbm [shape: bf16[27,128,128], index: 1, kind: input, shape index: {}]   ;;  %s4998_s2 = inlined_call_operand.vmem [shape: f32[7,128], index: 2, kind: input, shape index: {}]   ;;  %s4999_s3 = inlined_call_operand.vmem [shape: f32[32,128], index: 3, kind: output, shape index: {}]  }
   0x1 LB: > { %s3311_s13 = sadd.s32 4294967295, %s4605_s12   ;;  %p3313_p0 = scmp.ge.s32.totalorder %s4605_s12, 1  ;;  %s4605_s12 = sphi %s4632_s12, %s14_s12  }
   0x2   : > { %p113_p1 = scmp.lt.s32.totalorder %s4605_s12, 3  ;;  %s4607_s14 = smov [#allocation3]  }
   0x3   : > { %s125_s15 = sshll.u32 %s4607_s14, 4  ;;  %p4646_p3 = scmp.eq.s32.totalorder %s3311_s13, 0  ;;  %s126_s15 = int_to_ptr.vmem [resolvable:$true] %s125_s15 }
   0x4   : > { %p4640_p2 = pnand %p3313_p0, %p113_p1  ;;  %s4580_s18 = scalar_lea.vmem %s126_s15, 27648 }
   0x5   : > { %p4581_p7 = scmp.ne.s32.totalorder %s126_s15, %s4580_s18  ;;  %p4588_p10 = scmp.lt.s32.totalorder %s126_s15, %s126_s15 }
   0x6   : > { %p4334_p4 = pneg %p4640_p2  ;;  %p4589_p11 = scmp.lt.s32.totalorder %s4580_s18, %s4580_s18 }
   0x8   : > { %p4335_p5 = pnand %p4646_p3, %p4334_p4  ;;  %p4590_p12 = por %p4589_p11, %p4588_p10 }
   0xa   : > { %p4571_p6 = pneg %p4335_p5 }
   0xc   : > { %p4583_p8 = pnand %p4581_p7, %p4571_p6 }
   0xe   : > { %p4584_p9 = pneg %p4583_p8 }
  0x10   : > { %p4591_p13 = pnand %p4590_p12, %p4584_p9 }
  0x12   : > { %4594 = shalt.err (!%p4591_p13)
}
  0x13   : > { %s4608_s19 = smov 64   ;;  %s4609_s20 = smov 4  }
  0x14   : > { %4337 = dma.hbm_to_vmem [thread:$0]  (!%p4335_p5), %s4997_s1, 27648, %s126_s15, [#allocation4], %s4608_s19, %s4608_s19, %s4609_s20  }
  0x15   : > { %153 = sbr.rel (%p4640_p2) target bundleno = 1833 (0x729), region = 32 }
  0x1a   : > { %4600 = dma.done.wait (%p4646_p3), [#allocation4], 27648  }
  0x1b   : > { %4602 = vsyncadd (%p4646_p3), [#allocation4], 4294939648  ;;  %v4610_v0 = vmov 0.0   ;;  %vm4611_vm0 = vmmov 0   ;;  %s3318_s23 = sshll.u32 %s3311_s13, 1  ;;  %v4353_v1 = vld [vmem:[#allocation3 + $0x38] sm:$0xff]  }
  0x1c   : > { %3790 = vmatprep.subr.bf16.mxu0 %v4610_v0  ;;  %190 = vst [vmem:[#allocation2] sm:$0xf] %v4610_v0  ;;  %191 = vst [vmem:[#allocation2 + $0x14] sm:$0xf] %v4610_v0  ;;  %3810 = vmatprep.subr.bf16.mxu1 %v4610_v0  ;;  %v4354_v2 = vld [vmem:[#allocation3 + $0x78] sm:$0xff]   ;;  %v4355_v3 = vld [vmem:[#allocation3 + $0x30] sm:$0xff]  }
  0x1d   : > { %3806 = vmatprep.mubr.msk.bf16.mxu0 %vm4611_vm0, %v4610_v0  ;;  %3826 = vmatprep.mubr.msk.bf16.mxu1 %vm4611_vm0, %v4610_v0  ;;  %p178_p0 = scmp.lt.s32.totalorder %s3318_s23, 3  ;;  %v4356_v4 = vld [vmem:[#allocation3 + $0x70] sm:$0xff]   ;;  %v4357_v5 = vld [vmem:[#allocation3 + $0x28] sm:$0xff]   ;;  %v4359_v7 = vld [vmem:[#allocation3 + $0x20] sm:$0xff]  }
  0x1e   : > { %3791 = vmatpush3.bf16.msra.mxu0 %v4353_v1  ;;  %3811 = vmatpush3.bf16.msra.mxu1 %v4354_v2  ;;  %v4358_v6 = vld [vmem:[#allocation3 + $0x68] sm:$0xff]   ;;  %v4360_v8 = vld [vmem:[#allocation3 + $0x60] sm:$0xff]   ;;  %v4361_v9 = vld [vmem:[#allocation3 + $0x18] sm:$0xff]  }
  0x1f   : > { %3792 = vmatprep.subr.bf16.mxu0 %v4610_v0  ;;  %3812 = vmatprep.subr.bf16.mxu1 %v4610_v0  ;;  %s5003_s23 = smov (!%p178_p0, %s3318_s23), 3  ;;  %v4362_v10 = vld [vmem:[#allocation3 + $0x58] sm:$0xff]   ;;  %v4363_v13 = vld [vmem:[#allocation3 + $0x10] sm:$0xff]   ;;  %v4365_v15 = vld [vmem:[#allocation3 + $0x8] sm:$0xff]  }
  0x20   : > { %s3319_s24 = sshll.u32 %s5003_s23, 3  ;;  %v4364_v14 = vld [vmem:[#allocation3 + $0x50] sm:$0xff]   ;;  %v4366_v16 = vld [vmem:[#allocation3 + $0x48] sm:$0xff]   ;;  %v4367_v17 = vld [vmem:[#allocation3] sm:$0xff]  }
  0x21   : > { %s181_s27 = scalar_lea.vmem %s4996_s0, %s3319_s24  ;;  %v4368_v18 = vld [vmem:[#allocation3 + $0x40] sm:$0xff]   ;;  %v4369_v24 = vld [vmem:[#allocation3 + $0xb8] sm:$0xff]   ;;  %v4371_v27 = vld [vmem:[#allocation3 + $0xb0] sm:$0xff]   ;;  %s187_s18 = scalar_lea.vmem %s4999_s3, %s3319_s24 }
  0x22   : > { %3793 = vmatpush3.bf16.msra.mxu0 %v4355_v3  ;;  %3813 = vmatpush3.bf16.msra.mxu1 %v4356_v4  ;;  %v4689_v11 = vld [vmem:[%s181_s27] sm:$0xff]  ;;  %v4691_v12 = vld [vmem:[%s181_s27 + $0x8] sm:$0xff]  ;;  %v4370_v26 = vld [vmem:[#allocation3 + $0xf8] sm:$0xff]  }
  0x23   : > { %3794 = vmatprep.subr.bf16.mxu0 %v4610_v0  ;;  %3814 = vmatprep.subr.bf16.mxu1 %v4610_v0  ;;  %194 = vst [vmem:[#allocation2 + $0x4] sm:$0xff] %v4689_v11  ;;  %195 = vst [vmem:[#allocation2 + $0xc] sm:$0xff] %v4691_v12  ;;  %v4372_v28 = vld [vmem:[#allocation3 + $0xf0] sm:$0xff]   ;;  %v4373_v29 = vld [vmem:[#allocation3 + $0xa8] sm:$0xff]   ;;  %v424_v44 = vpack.c.bf16 %v4691_v12, %v4689_v11 }
  0x24   : > { %v4374_v30 = vld [vmem:[#allocation3 + $0xe8] sm:$0xff]   ;;  %v4375_v31 = vld [vmem:[#allocation3 + $0xa0] sm:$0xff]   ;;  %v4377_v33 = vld [vmem:[#allocation3 + $0x98] sm:$0xff]  }
  0x25   : > { %v4376_v32 = vld [vmem:[#allocation3 + $0xe0] sm:$0xff]   ;;  %v4378_v34 = vld [vmem:[#allocation3 + $0xd8] sm:$0xff]   ;;  %v4379_v35 = vld [vmem:[#allocation3 + $0x90] sm:$0xff]  }
  0x26   : > { %3795 = vmatpush3.bf16.msra.mxu0 %v4357_v5  ;;  %3815 = vmatpush3.bf16.msra.mxu1 %v4358_v6  ;;  %v4380_v36 = vld [vmem:[#allocation3 + $0xd0] sm:$0xff]   ;;  %v4381_v37 = vld [vmem:[#allocation3 + $0x88] sm:$0xff]   ;;  %v4383_v39 = vld [vmem:[#allocation3 + $0x80] sm:$0xff]  }
  0x27   : > { %3796 = vmatprep.subr.bf16.mxu0 %v4610_v0  ;;  %3816 = vmatprep.subr.bf16.mxu1 %v4610_v0  ;;  %v4382_v38 = vld [vmem:[#allocation3 + $0xc8] sm:$0xff]   ;;  %v4384_v40 = vld [vmem:[#allocation3 + $0xc0] sm:$0xff]   ;;  %v4385_v43 = vld [vmem:[#allocation3 + $0x138] sm:$0xff]  }
  0x28   : > { %v4386_v46 = vld [vmem:[#allocation3 + $0x130] sm:$0xff]   ;;  %v4387_v47 = vld [vmem:[#allocation3 + $0x128] sm:$0xff]   ;;  %v4388_v48 = vld [vmem:[#allocation3 + $0x120] sm:$0xff]  }
  0x29   : > { %v4389_v49 = vld [vmem:[#allocation3 + $0x118] sm:$0xff]   ;;  %v4390_v50 = vld [vmem:[#allocation3 + $0x110] sm:$0xff]   ;;  %v4391_v51 = vld [vmem:[#allocation3 + $0x108] sm:$0xff]  }
  0x2a   : > { %3797 = vmatpush3.bf16.msra.mxu0 %v4359_v7  ;;  %3817 = vmatpush3.bf16.msra.mxu1 %v4360_v8  ;;  %v201_v19 = vld [vmem:[#allocation2 + $0x2] sm:$0xff]  ;;  %v202_v20 = vld [vmem:[#allocation2 + $0xa] sm:$0xff]  ;;  %v4392_v52 = vld [vmem:[#allocation3 + $0x100] sm:$0xff]  }
  0x2b   : > { %3798 = vmatprep.subr.bf16.mxu0 %v4610_v0  ;;  %3818 = vmatprep.subr.bf16.mxu1 %v4610_v0  ;;  %v311_v21 = vld [vmem:[#allocation2 + $0x3] sm:$0xff]  ;;  %v312_v22 = vld [vmem:[#allocation2 + $0xb] sm:$0xff]  ;;  %v203_v23 = vpack.c.bf16 %v202_v20, %v201_v19  ;;  %v4399_v62 = vld [vmem:[#allocation3 + $0x160] sm:$0xff]  }
  0x2c   : > { %v313_v25 = vpack.c.bf16 %v312_v22, %v311_v21  ;;  %v533_v41 = vld [vmem:[#allocation2 + $0x5] sm:$0xff]  ;;  %v534_v42 = vld [vmem:[#allocation2 + $0xd] sm:$0xff]  ;;  %v4400_v63 = vld [vmem:[#allocation3 + $0x1a0] sm:$0xff]  }
  0x2d   : > { %v535_v45 = vpack.c.bf16 %v534_v42, %v533_v41  ;;  %v644_v53 = vld [vmem:[#allocation2 + $0x6] sm:$0xff]  ;;  %v645_v54 = vld [vmem:[#allocation2 + $0xe] sm:$0xff]  ;;  %v4408_v6 = vld [vmem:[#allocation3 + $0x180] sm:$0xff]  }
  0x2e   : > { %3799 = vmatpush3.bf16.msra.mxu0 %v4361_v9  ;;  %3819 = vmatpush3.bf16.msra.mxu1 %v4362_v10  ;;  %v646_v55 = vpack.c.bf16 %v645_v54, %v644_v53  ;;  %v4393_v56 = vld [vmem:[#allocation3 + $0x178] sm:$0xff]   ;;  %v4395_v58 = vld [vmem:[#allocation3 + $0x170] sm:$0xff]   ;;  %v4397_v60 = vld [vmem:[#allocation3 + $0x168] sm:$0xff]  }
  0x2f   : > { %3800 = vmatprep.subr.bf16.mxu0 %v4610_v0  ;;  %3820 = vmatprep.subr.bf16.mxu1 %v4610_v0  ;;  %v4394_v57 = vld [vmem:[#allocation3 + $0x1b8] sm:$0xff]   ;;  %v4396_v59 = vld [vmem:[#allocation3 + $0x1b0] sm:$0xff]   ;;  %v4398_v61 = vld [vmem:[#allocation3 + $0x1a8] sm:$0xff]  }
  0x30   : > { %v4402_v1 = vld [vmem:[#allocation3 + $0x198] sm:$0xff]   ;;  %v4404_v2 = vld [vmem:[#allocation3 + $0x190] sm:$0xff]   ;;  %v4406_v4 = vld [vmem:[#allocation3 + $0x188] sm:$0xff]  }
  0x31   : > { %v4401_v3 = vld [vmem:[#allocation3 + $0x158] sm:$0xff]   ;;  %v4403_v5 = vld [vmem:[#allocation3 + $0x150] sm:$0xff]   ;;  %v4405_v7 = vld [vmem:[#allocation3 + $0x148] sm:$0xff]  }
  0x32   : > { %3801 = vmatpush3.bf16.msra.mxu0 %v4363_v13  ;;  %3821 = vmatpush3.bf16.msra.mxu1 %v4364_v14  ;;  %v4407_v8 = vld [vmem:[#allocation3 + $0x140] sm:$0xff]  }
  0x33   : > { %3802 = vmatprep.subr.bf16.mxu0 %v4610_v0  ;;  %3822 = vmatprep.subr.bf16.mxu1 %v4610_v0 }
  0x36   : > { %3803 = vmatpush3.bf16.msra.mxu0 %v4365_v15  ;;  %3823 = vmatpush3.bf16.msra.mxu1 %v4366_v16 }
  0x37   : > { %3804 = vmatprep.subr.bf16.mxu0 %v4610_v0  ;;  %3824 = vmatprep.subr.bf16.mxu1 %v4610_v0 }
  0x3a   : > { %3805 = vmatpush3.bf16.msra.mxu0 %v4367_v17  ;;  %3825 = vmatpush3.bf16.msra.mxu1 %v4368_v18 }
  0x3b   : > { %3830 = vmatprep.subr.bf16.mxu0 %v4610_v0  ;;  %3850 = vmatprep.subr.bf16.mxu1 %v4610_v0 }
  0x3d   : > { %3807 = vmatmul.mubr.bf16.vlgmr.msra.gmra.mxu0 %v203_v23  ;;  %3827 = vmatmul.mubr.bf16.vlgmr.msra.gmra.mxu1 %v313_v25  ;;  %v3322_v25 = vld [vmem:[%s4998_s2] ss:$0 sm:$0xff] }
  0x3e   : > { %3831 = vmatpush3.bf16.msra.mxu0 %v4369_v24  ;;  %3851 = vmatpush3.bf16.msra.mxu1 %v4370_v26 }
  0x3f   : > { %3832 = vmatprep.subr.bf16.mxu0 %v4610_v0  ;;  %3852 = vmatprep.subr.bf16.mxu1 %v4610_v0 }
  0x40   : > { %3846 = vmatprep.mubr.msk.bf16.mxu0 %vm4611_vm0, %v4610_v0  ;;  %3866 = vmatprep.mubr.msk.bf16.mxu1 %vm4611_vm0, %v4610_v0 }
  0x42   : > { %3833 = vmatpush3.bf16.msra.mxu0 %v4371_v27  ;;  %3853 = vmatpush3.bf16.msra.mxu1 %v4372_v28 }
  0x43   : > { %3834 = vmatprep.subr.bf16.mxu0 %v4610_v0  ;;  %3854 = vmatprep.subr.bf16.mxu1 %v4610_v0 }
  0x46   : > { %3835 = vmatpush3.bf16.msra.mxu0 %v4373_v29  ;;  %3855 = vmatpush3.bf16.msra.mxu1 %v4374_v30 }
  0x47   : > { %3836 = vmatprep.subr.bf16.mxu0 %v4610_v0  ;;  %3856 = vmatprep.subr.bf16.mxu1 %v4610_v0 }
  0x4a   : > { %3837 = vmatpush3.bf16.msra.mxu0 %v4375_v31  ;;  %3857 = vmatpush3.bf16.msra.mxu1 %v4376_v32 }
  0x4b   : > { %3838 = vmatprep.subr.bf16.mxu0 %v4610_v0  ;;  %3858 = vmatprep.subr.bf16.mxu1 %v4610_v0 }
  0x4e   : > { %3839 = vmatpush3.bf16.msra.mxu0 %v4377_v33  ;;  %3859 = vmatpush3.bf16.msra.mxu1 %v4378_v34 }
  0x4f   : > { %3840 = vmatprep.subr.bf16.mxu0 %v4610_v0  ;;  %3860 = vmatprep.subr.bf16.mxu1 %v4610_v0 }
  0x52   : > { %3841 = vmatpush3.bf16.msra.mxu0 %v4379_v35  ;;  %3861 = vmatpush3.bf16.msra.mxu1 %v4380_v36 }
  0x53   : > { %3842 = vmatprep.subr.bf16.mxu0 %v4610_v0  ;;  %3862 = vmatprep.subr.bf16.mxu1 %v4610_v0 }
  0x56   : > { %3843 = vmatpush3.bf16.msra.mxu0 %v4381_v37  ;;  %3863 = vmatpush3.bf16.msra.mxu1 %v4382_v38 }
  0x57   : > { %3844 = vmatprep.subr.bf16.mxu0 %v4610_v0  ;;  %3864 = vmatprep.subr.bf16.mxu1 %v4610_v0 }
  0x5a   : > { %3845 = vmatpush3.bf16.msra.mxu0 %v4383_v39  ;;  %3865 = vmatpush3.bf16.msra.mxu1 %v4384_v40 }
  0x5b   : > { %3870 = vmatprep.subr.bf16.mxu0 %v4610_v0  ;;  %3890 = vmatprep.subr.bf16.mxu1 %v4610_v0 }
  0x5d   : > { %3847 = vmatmul.mubr.bf16.vlgmr.msra.gmra.mxu0 %v424_v44  ;;  %3867 = vmatmul.mubr.bf16.vlgmr.msra.gmra.mxu1 %v535_v45  ;;  %v4410_v45 = vld [vmem:[#allocation3 + $0x1f0] sm:$0xff]  }
  0x5e   : > { %3871 = vmatpush3.bf16.msra.mxu0 %v4385_v43  ;;  %3886 = vmatprep.mubr.msk.bf16.mxu0 %vm4611_vm0, %v4610_v0  ;;  %v4409_v43 = vld [vmem:[#allocation3 + $0x1f8] sm:$0xff]  }
  0x5f   : > { %3872 = vmatprep.subr.bf16.mxu0 %v4610_v0  ;;  %3906 = vmatprep.mubr.msk.bf16.mxu1 %vm4611_vm0, %v4610_v0 }
  0x60   : > { %3891 = vmatpush3.bf16.msra.mxu1 %v4393_v56  ;;  %v4418_v56 = vld [vmem:[#allocation3 + $0x278] sm:$0xff]  }
  0x61   : > { %3892 = vmatprep.subr.bf16.mxu1 %v4610_v0 }
  0x62   : > { %3873 = vmatpush3.bf16.msra.mxu0 %v4386_v46  ;;  %v4411_v46 = vld [vmem:[#allocation3 + $0x1e8] sm:$0xff]  }
  0x63   : > { %3874 = vmatprep.subr.bf16.mxu0 %v4610_v0 }
  0x64   : > { %3893 = vmatpush3.bf16.msra.mxu1 %v4395_v58  ;;  %v4420_v58 = vld [vmem:[#allocation3 + $0x270] sm:$0xff]  }
  0x65   : > { %3894 = vmatprep.subr.bf16.mxu1 %v4610_v0 }
  0x66   : > { %3875 = vmatpush3.bf16.msra.mxu0 %v4387_v47  ;;  %v4412_v47 = vld [vmem:[#allocation3 + $0x1e0] sm:$0xff]  }
  0x67   : > { %3876 = vmatprep.subr.bf16.mxu0 %v4610_v0 }
  0x68   : > { %3895 = vmatpush3.bf16.msra.mxu1 %v4397_v60  ;;  %v4422_v60 = vld [vmem:[#allocation3 + $0x268] sm:$0xff]  }
  0x69   : > { %3896 = vmatprep.subr.bf16.mxu1 %v4610_v0 }
  0x6a   : > { %3877 = vmatpush3.bf16.msra.mxu0 %v4388_v48  ;;  %v4413_v48 = vld [vmem:[#allocation3 + $0x1d8] sm:$0xff]  }
  0x6b   : > { %3878 = vmatprep.subr.bf16.mxu0 %v4610_v0 }
  0x6c   : > { %3897 = vmatpush3.bf16.msra.mxu1 %v4399_v62  ;;  %v4424_v62 = vld [vmem:[#allocation3 + $0x260] sm:$0xff]  }
  0x6d   : > { %3898 = vmatprep.subr.bf16.mxu1 %v4610_v0 }
  0x6e   : > { %3879 = vmatpush3.bf16.msra.mxu0 %v4389_v49  ;;  %v4414_v49 = vld [vmem:[#allocation3 + $0x1d0] sm:$0xff]  }
  0x6f   : > { %3880 = vmatprep.subr.bf16.mxu0 %v4610_v0 }
  0x70   : > { %3899 = vmatpush3.bf16.msra.mxu1 %v4401_v3  ;;  %v4430_v3 = vld [vmem:[#allocation3 + $0x248] sm:$0xff]  }
  0x71   : > { %3900 = vmatprep.subr.bf16.mxu1 %v4610_v0 }
  0x72   : > { %3881 = vmatpush3.bf16.msra.mxu0 %v4390_v50  ;;  %v4415_v50 = vld [vmem:[#allocation3 + $0x1c8] sm:$0xff]  }
  0x73   : > { %3882 = vmatprep.subr.bf16.mxu0 %v4610_v0 }
  0x74   : > { %3901 = vmatpush3.bf16.msra.mxu1 %v4403_v5  ;;  %v4432_v5 = vld [vmem:[#allocation3 + $0x240] sm:$0xff]  }
  0x75   : > { %3902 = vmatprep.subr.bf16.mxu1 %v4610_v0 }
  0x76   : > { %3883 = vmatpush3.bf16.msra.mxu0 %v4391_v51  ;;  %v4416_v51 = vld [vmem:[#allocation3 + $0x1c0] sm:$0xff]  }
  0x77   : > { %3884 = vmatprep.subr.bf16.mxu0 %v4610_v0 }
  0x78   : > { %3903 = vmatpush3.bf16.msra.mxu1 %v4405_v7  ;;  %v4431_v7 = vld [vmem:[#allocation3 + $0x200] sm:$0xff]  }
  0x79   : > { %3904 = vmatprep.subr.bf16.mxu1 %v4610_v0 }
  0x7a   : > { %3885 = vmatpush3.bf16.msra.mxu0 %v4392_v52 }
  0x7b   : > { %3910 = vmatprep.subr.bf16.mxu0 %v4610_v0 }
  0x7c   : > { %3905 = vmatpush3.bf16.msra.mxu1 %v4407_v8 }
  0x7d   : > { %3887 = vmatmul.mubr.bf16.vlgmr.msra.gmra.mxu0 %v646_v55  ;;  %3930 = vmatprep.subr.bf16.mxu1 %v4610_v0  ;;  %v4417_v55 = vld [vmem:[#allocation3 + $0x238] sm:$0xff]  }
  0x7e   : > { %3926 = vmatprep.mubr.msk.bf16.mxu0 %vm4611_vm0, %v4610_v0  ;;  %3911 = vmatpush3.bf16.msra.mxu0 %v4394_v57  ;;  %v4419_v57 = vld [vmem:[#allocation3 + $0x230] sm:$0xff]  }
  0x7f   : > { %3912 = vmatprep.subr.bf16.mxu0 %v4610_v0 }
  0x82   : > { %3913 = vmatpush3.bf16.msra.mxu0 %v4396_v59  ;;  %v4421_v59 = vld [vmem:[#allocation3 + $0x228] sm:$0xff]  }
  0x83   : > { %3914 = vmatprep.subr.bf16.mxu0 %v4610_v0 }
  0x86   : > { %3915 = vmatpush3.bf16.msra.mxu0 %v4398_v61  ;;  %v4423_v61 = vld [vmem:[#allocation3 + $0x220] sm:$0xff]  }
  0x87   : > { %3916 = vmatprep.subr.bf16.mxu0 %v4610_v0 }
  0x8a   : > { %3917 = vmatpush3.bf16.msra.mxu0 %v4400_v63  ;;  %v4426_v63 = vld [vmem:[#allocation3 + $0x258] sm:$0xff]  }
  0x8b   : > { %3918 = vmatprep.subr.bf16.mxu0 %v4610_v0 }
  0x8e   : > { %3919 = vmatpush3.bf16.msra.mxu0 %v4402_v1  ;;  %v4428_v1 = vld [vmem:[#allocation3 + $0x250] sm:$0xff]  }
  0x8f   : > { %3920 = vmatprep.subr.bf16.mxu0 %v4610_v0 }
  0x92   : > { %3921 = vmatpush3.bf16.msra.mxu0 %v4404_v2  ;;  %v4425_v2 = vld [vmem:[#allocation3 + $0x218] sm:$0xff]  }
  0x93   : > { %3922 = vmatprep.subr.bf16.mxu0 %v4610_v0 }
  0x96   : > { %3923 = vmatpush3.bf16.msra.mxu0 %v4406_v4  ;;  %v4427_v4 = vld [vmem:[#allocation3 + $0x210] sm:$0xff]  }
  0x97   : > { %3924 = vmatprep.subr.bf16.mxu0 %v4610_v0 }
  0x9a   : > { %3925 = vmatpush3.bf16.msra.mxu0 %v4408_v6  ;;  %v4429_v6 = vld [vmem:[#allocation3 + $0x208] sm:$0xff]  }
  0x9b   : > { %3950 = vmatprep.subr.bf16.mxu0 %v4610_v0 }
  0xfd   : > { %v302_v9 = vpop.f32.mrf.mxu0  ;;  %v413_v10 = vpop.f32.mrf.mxu1 }
  0xfe   : > { %v309_v26 = vadd.f32 %v3322_v25, %v302_v9 }
  0xff   : > { %v3808_v11 = vpop.f32.mrf.mxu0  ;;  %v3828_v12 = vpop.f32.mrf.mxu1 }
 0x100   : > { %v420_v27 = vadd.f32 %v413_v10, %v309_v26 }
 0x101   : > { %v305_v13 = vpop.f32.mrf.mxu0  ;;  %v416_v14 = vpop.f32.mrf.mxu1 }
 0x102   : > { %v310_v28 = vadd.f32 %v3322_v25, %v305_v13 }
 0x103   : > { %v3809_v15 = vpop.f32.mrf.mxu0  ;;  %v3829_v16 = vpop.f32.mrf.mxu1 }
 0x104   : > { %v421_v30 = vadd.f32 %v416_v14, %v310_v28  ;;  %v3363_v16 = vld [vmem:[%s4998_s2 + $0x1] ss:$0 sm:$0xff] }
 0x11d   : > { %v524_v17 = vpop.f32.mrf.mxu0  ;;  %v635_v18 = vpop.f32.mrf.mxu1 }
 0x11e   : > { %v531_v29 = vadd.f32 %v524_v17, %v420_v27 }
 0x11f   : > { %v3848_v19 = vpop.f32.mrf.mxu0  ;;  %v3868_v20 = vpop.f32.mrf.mxu1 }
 0x120   : > { %v642_v31 = vadd.f32 %v635_v18, %v531_v29 }
 0x121   : > { %v527_v21 = vpop.f32.mrf.mxu0  ;;  %v638_v22 = vpop.f32.mrf.mxu1 }
 0x122   : > { %v532_v32 = vadd.f32 %v527_v21, %v421_v30  ;;  %v4433_v30 = vld [vmem:[#allocation3 + $0x2b8] sm:$0xff]  }
 0x123   : > { %v3849_v23 = vpop.f32.mrf.mxu0  ;;  %v3869_v24 = vpop.f32.mrf.mxu1 }
 0x124   : > { %v643_v36 = vadd.f32 %v638_v22, %v532_v32  ;;  %v4434_v32 = vld [vmem:[#allocation3 + $0x2b0] sm:$0xff]  }
 0x13d   : > { %v746_v33 = vpop.f32.mrf.mxu0 }
 0x13e   : > { %v753_v34 = vadd.f32 %v746_v33, %v642_v31  ;;  %v4435_v33 = vld [vmem:[#allocation3 + $0x2a8] sm:$0xff]  }
 0x13f   : > { %v3888_v35 = vpop.f32.mrf.mxu0 }
 0x140   : > { %755 = vst [vmem:[#allocation2 + $0x4] sm:$0xff] %v753_v34  ;;  %v4437_v35 = vld [vmem:[#allocation3 + $0x298] sm:$0xff]  }
 0x141   : > { %v749_v37 = vpop.f32.mrf.mxu0 }
 0x142   : > { %v754_v38 = vadd.f32 %v749_v37, %v643_v36  ;;  %v4438_v36 = vld [vmem:[#allocation3 + $0x290] sm:$0xff]   ;;  %v4439_v37 = vld [vmem:[#allocation3 + $0x288] sm:$0xff]  }
 0x143   : > { %v3889_v39 = vpop.f32.mrf.mxu0 }
 0x144   : > { %756 = vst [vmem:[#allocation2 + $0xc] sm:$0xff] %v754_v38  ;;  %v875_v40 = vpack.c.bf16 %v754_v38, %v753_v34  ;;  %v4436_v34 = vld [vmem:[#allocation3 + $0x2a0] sm:$0xff]  }
 0x145   : > { %v4440_v38 = vld [vmem:[#allocation3 + $0x280] sm:$0xff]  }
 0x146   : > { %3927 = vmatmul.mubr.bf16.vlgmr.msra.gmra.mxu0 %v875_v40 }
 0x147   : > { %3966 = vmatprep.mubr.msk.bf16.mxu0 %vm4611_vm0, %v4610_v0  ;;  %v762_v41 = vld [vmem:[#allocation2 + $0x3] sm:$0xff]  ;;  %3951 = vmatpush3.bf16.msra.mxu0 %v4417_v55  ;;  %v4456_v55 = vld [vmem:[#allocation3 + $0x300] sm:$0xff]  }
 0x148   : > { %3952 = vmatprep.subr.bf16.mxu0 %v4610_v0 }
 0x14b   : > { %v763_v42 = vld [vmem:[#allocation2 + $0xb] sm:$0xff]  ;;  %3953 = vmatpush3.bf16.msra.mxu0 %v4419_v57  ;;  %v4455_v57 = vld [vmem:[#allocation3 + $0x2c0] sm:$0xff]  }
 0x14c   : > { %v764_v44 = vpack.c.bf16 %v763_v42, %v762_v41  ;;  %v984_v52 = vld [vmem:[#allocation2 + $0x5] sm:$0xff]  ;;  %v985_v53 = vld [vmem:[#allocation2 + $0xd] sm:$0xff]  ;;  %3954 = vmatprep.subr.bf16.mxu0 %v4610_v0 }
 0x14d   : > { %v986_v54 = vpack.c.bf16 %v985_v53, %v984_v52  ;;  %v4441_v42 = vld [vmem:[#allocation3 + $0x2f8] sm:$0xff]   ;;  %v4454_v53 = vld [vmem:[#allocation3 + $0x308] sm:$0xff]  }
 0x14e   : > { %3907 = vmatmul.mubr.bf16.vlgmr.msra.gmra.mxu1 %v764_v44  ;;  %v4443_v44 = vld [vmem:[#allocation3 + $0x2f0] sm:$0xff]   ;;  %v4449_v52 = vld [vmem:[#allocation3 + $0x2d8] sm:$0xff]  }
 0x14f   : > { %3931 = vmatpush3.bf16.msra.mxu1 %v4409_v43  ;;  %3946 = vmatprep.mubr.msk.bf16.mxu1 %vm4611_vm0, %v4610_v0  ;;  %v4442_v43 = vld [vmem:[#allocation3 + $0x338] sm:$0xff]  }
 0x150   : > { %3932 = vmatprep.subr.bf16.mxu1 %v4610_v0  ;;  %3955 = vmatpush3.bf16.msra.mxu0 %v4421_v59 }
 0x151   : > { %3956 = vmatprep.subr.bf16.mxu0 %v4610_v0 }
 0x153   : > { %3933 = vmatpush3.bf16.msra.mxu1 %v4410_v45  ;;  %v4444_v45 = vld [vmem:[#allocation3 + $0x330] sm:$0xff]  }
 0x154   : > { %3934 = vmatprep.subr.bf16.mxu1 %v4610_v0  ;;  %3957 = vmatpush3.bf16.msra.mxu0 %v4423_v61 }
 0x155   : > { %3958 = vmatprep.subr.bf16.mxu0 %v4610_v0 }
 0x157   : > { %3935 = vmatpush3.bf16.msra.mxu1 %v4411_v46  ;;  %v4445_v46 = vld [vmem:[#allocation3 + $0x2e8] sm:$0xff]  }
 0x158   : > { %3936 = vmatprep.subr.bf16.mxu1 %v4610_v0  ;;  %3959 = vmatpush3.bf16.msra.mxu0 %v4425_v2 }
 0x159   : > { %3960 = vmatprep.subr.bf16.mxu0 %v4610_v0 }
 0x15b   : > { %3937 = vmatpush3.bf16.msra.mxu1 %v4412_v47  ;;  %v4446_v47 = vld [vmem:[#allocation3 + $0x328] sm:$0xff]  }
 0x15c   : > { %3938 = vmatprep.subr.bf16.mxu1 %v4610_v0  ;;  %3961 = vmatpush3.bf16.msra.mxu0 %v4427_v4 }
 0x15d   : > { %3962 = vmatprep.subr.bf16.mxu0 %v4610_v0 }
 0x15f   : > { %3939 = vmatpush3.bf16.msra.mxu1 %v4413_v48  ;;  %v4447_v48 = vld [vmem:[#allocation3 + $0x2e0] sm:$0xff]  }
 0x160   : > { %3940 = vmatprep.subr.bf16.mxu1 %v4610_v0  ;;  %3963 = vmatpush3.bf16.msra.mxu0 %v4429_v6 }
 0x161   : > { %3964 = vmatprep.subr.bf16.mxu0 %v4610_v0 }
 0x163   : > { %3941 = vmatpush3.bf16.msra.mxu1 %v4414_v49  ;;  %v4448_v49 = vld [vmem:[#allocation3 + $0x320] sm:$0xff]  }
 0x164   : > { %3942 = vmatprep.subr.bf16.mxu1 %v4610_v0  ;;  %3965 = vmatpush3.bf16.msra.mxu0 %v4431_v7 }
 0x165   : > { %3990 = vmatprep.subr.bf16.mxu0 %v4610_v0 }
 0x167   : > { %3943 = vmatpush3.bf16.msra.mxu1 %v4415_v50  ;;  %v4450_v50 = vld [vmem:[#allocation3 + $0x318] sm:$0xff]  }
 0x168   : > { %3944 = vmatprep.subr.bf16.mxu1 %v4610_v0 }
 0x16b   : > { %3945 = vmatpush3.bf16.msra.mxu1 %v4416_v51  ;;  %v4452_v51 = vld [vmem:[#allocation3 + $0x310] sm:$0xff]  }
 0x16c   : > { %3970 = vmatprep.subr.bf16.mxu1 %v4610_v0 }
 0x16e   : > { %3947 = vmatmul.mubr.bf16.vlgmr.msra.gmra.mxu1 %v986_v54  ;;  %v4451_v54 = vld [vmem:[#allocation3 + $0x2d0] sm:$0xff]  }
 0x16f   : > { %3986 = vmatprep.mubr.msk.bf16.mxu1 %vm4611_vm0, %v4610_v0  ;;  %3971 = vmatpush3.bf16.msra.mxu1 %v4418_v56  ;;  %v4453_v56 = vld [vmem:[#allocation3 + $0x2c8] sm:$0xff]  }
 0x170   : > { %3972 = vmatprep.subr.bf16.mxu1 %v4610_v0 }
 0x173   : > { %3973 = vmatpush3.bf16.msra.mxu1 %v4420_v58 }
 0x174   : > { %3974 = vmatprep.subr.bf16.mxu1 %v4610_v0 }
 0x177   : > { %3975 = vmatpush3.bf16.msra.mxu1 %v4422_v60 }
 0x178   : > { %3976 = vmatprep.subr.bf16.mxu1 %v4610_v0 }
 0x17b   : > { %3977 = vmatpush3.bf16.msra.mxu1 %v4424_v62 }
 0x17c   : > { %3978 = vmatprep.subr.bf16.mxu1 %v4610_v0 }
 0x17f   : > { %3979 = vmatpush3.bf16.msra.mxu1 %v4426_v63 }
 0x180   : > { %3980 = vmatprep.subr.bf16.mxu1 %v4610_v0 }
 0x183   : > { %3981 = vmatpush3.bf16.msra.mxu1 %v4428_v1 }
 0x184   : > { %3982 = vmatprep.subr.bf16.mxu1 %v4610_v0 }
 0x187   : > { %3983 = vmatpush3.bf16.msra.mxu1 %v4430_v3  ;;  %v3388_v3 = vld [vmem:[%s4998_s2 + $0x2] ss:$0 sm:$0xff] }
 0x188   : > { %3984 = vmatprep.subr.bf16.mxu1 %v4610_v0 }
 0x18b   : > { %3985 = vmatpush3.bf16.msra.mxu1 %v4432_v5 }
 0x18c   : > { %4010 = vmatprep.subr.bf16.mxu1 %v4610_v0 }
 0x206   : > { %v975_v8 = vpop.f32.mrf.mxu0 }
 0x208   : > { %v3928_v9 = vpop.f32.mrf.mxu0 }
 0x20a   : > { %v978_v10 = vpop.f32.mrf.mxu0 }
 0x20c   : > { %v3929_v11 = vpop.f32.mrf.mxu0 }
 0x20e   : > { %v864_v12 = vpop.f32.mrf.mxu1 }
 0x20f   : > { %v871_v17 = vadd.f32 %v3363_v16, %v864_v12 }
 0x210   : > { %v3908_v13 = vpop.f32.mrf.mxu1 }
 0x211   : > { %v982_v18 = vadd.f32 %v975_v8, %v871_v17 }
 0x212   : > { %v867_v14 = vpop.f32.mrf.mxu1 }
 0x213   : > { %v872_v19 = vadd.f32 %v3363_v16, %v867_v14 }
 0x214   : > { %v3909_v15 = vpop.f32.mrf.mxu1 }
 0x215   : > { %v983_v23 = vadd.f32 %v978_v10, %v872_v19  ;;  %v4457_v19 = vld [vmem:[#allocation3 + $0x378] sm:$0xff]  }
 0x22e   : > { %v1086_v20 = vpop.f32.mrf.mxu1 }
 0x22f   : > { %v1093_v21 = vadd.f32 %v1086_v20, %v982_v18 }
 0x230   : > { %v3948_v22 = vpop.f32.mrf.mxu1 }
 0x231   : > { %1095 = vst [vmem:[#allocation2 + $0x4] sm:$0xff] %v1093_v21  ;;  %v4459_v22 = vld [vmem:[#allocation3 + $0x368] sm:$0xff]  }
 0x232   : > { %v1089_v24 = vpop.f32.mrf.mxu1 }
 0x233   : > { %v1094_v25 = vadd.f32 %v1089_v24, %v983_v23  ;;  %v4460_v23 = vld [vmem:[#allocation3 + $0x360] sm:$0xff]   ;;  %v4461_v24 = vld [vmem:[#allocation3 + $0x358] sm:$0xff]  }
 0x234   : > { %v3949_v26 = vpop.f32.mrf.mxu1 }
 0x235   : > { %1096 = vst [vmem:[#allocation2 + $0xc] sm:$0xff] %v1094_v25  ;;  %v1215_v27 = vpack.c.bf16 %v1094_v25, %v1093_v21  ;;  %v4458_v21 = vld [vmem:[#allocation3 + $0x370] sm:$0xff]   ;;  %v4463_v26 = vld [vmem:[#allocation3 + $0x348] sm:$0xff]  }
 0x236   : > { %v4462_v25 = vld [vmem:[#allocation3 + $0x350] sm:$0xff]  }
 0x237   : > { %3987 = vmatmul.mubr.bf16.vlgmr.msra.gmra.mxu1 %v1215_v27  ;;  %v4464_v27 = vld [vmem:[#allocation3 + $0x340] sm:$0xff]  }
 0x238   : > { %4026 = vmatprep.mubr.msk.bf16.mxu1 %vm4611_vm0, %v4610_v0  ;;  %v1102_v28 = vld [vmem:[#allocation2 + $0x3] sm:$0xff]  ;;  %4011 = vmatpush3.bf16.msra.mxu1 %v4441_v42 }
 0x239   : > { %4012 = vmatprep.subr.bf16.mxu1 %v4610_v0  ;;  %v4478_v42 = vld [vmem:[#allocation3 + $0x3c8] sm:$0xff]  }
 0x23c   : > { %v1103_v29 = vld [vmem:[#allocation2 + $0xb] sm:$0xff]  ;;  %4013 = vmatpush3.bf16.msra.mxu1 %v4443_v44  ;;  %v4480_v44 = vld [vmem:[#allocation3 + $0x3c0] sm:$0xff]  }
 0x23d   : > { %v1104_v31 = vpack.c.bf16 %v1103_v29, %v1102_v28  ;;  %v1324_v39 = vld [vmem:[#allocation2 + $0x5] sm:$0xff]  ;;  %v1325_v40 = vld [vmem:[#allocation2 + $0xd] sm:$0xff]  ;;  %4014 = vmatprep.subr.bf16.mxu1 %v4610_v0 }
 0x23e   : > { %v1326_v41 = vpack.c.bf16 %v1325_v40, %v1324_v39  ;;  %v4474_v39 = vld [vmem:[#allocation3 + $0x3d8] sm:$0xff]   ;;  %v4476_v40 = vld [vmem:[#allocation3 + $0x3d0] sm:$0xff]  }
 0x23f   : > { %3967 = vmatmul.mubr.bf16.vlgmr.msra.gmra.mxu0 %v1104_v31  ;;  %v4465_v31 = vld [vmem:[#allocation3 + $0x3b8] sm:$0xff]  }
 0x240   : > { %3991 = vmatpush3.bf16.msra.mxu0 %v4433_v30  ;;  %4006 = vmatprep.mubr.msk.bf16.mxu0 %vm4611_vm0, %v4610_v0 }
 0x241   : > { %3992 = vmatprep.subr.bf16.mxu0 %v4610_v0  ;;  %4015 = vmatpush3.bf16.msra.mxu1 %v4445_v46  ;;  %v4479_v46 = vld [vmem:[#allocation3 + $0x380] sm:$0xff]  }
 0x242   : > { %4016 = vmatprep.subr.bf16.mxu1 %v4610_v0 }
 0x244   : > { %3993 = vmatpush3.bf16.msra.mxu0 %v4434_v32  ;;  %v4466_v32 = vld [vmem:[#allocation3 + $0x3f8] sm:$0xff]  }
 0x245   : > { %3994 = vmatprep.subr.bf16.mxu0 %v4610_v0  ;;  %4017 = vmatpush3.bf16.msra.mxu1 %v4447_v48 }
 0x246   : > { %4018 = vmatprep.subr.bf16.mxu1 %v4610_v0 }
 0x248   : > { %3995 = vmatpush3.bf16.msra.mxu0 %v4435_v33  ;;  %v4467_v33 = vld [vmem:[#allocation3 + $0x3b0] sm:$0xff]  }
 0x249   : > { %3996 = vmatprep.subr.bf16.mxu0 %v4610_v0  ;;  %4019 = vmatpush3.bf16.msra.mxu1 %v4449_v52 }
 0x24a   : > { %4020 = vmatprep.subr.bf16.mxu1 %v4610_v0 }
 0x24c   : > { %3997 = vmatpush3.bf16.msra.mxu0 %v4436_v34  ;;  %v4468_v34 = vld [vmem:[#allocation3 + $0x3f0] sm:$0xff]  }
 0x24d   : > { %3998 = vmatprep.subr.bf16.mxu0 %v4610_v0  ;;  %4021 = vmatpush3.bf16.msra.mxu1 %v4451_v54 }
 0x24e   : > { %4022 = vmatprep.subr.bf16.mxu1 %v4610_v0 }
 0x250   : > { %3999 = vmatpush3.bf16.msra.mxu0 %v4437_v35  ;;  %v4469_v35 = vld [vmem:[#allocation3 + $0x3a8] sm:$0xff]  }
 0x251   : > { %4000 = vmatprep.subr.bf16.mxu0 %v4610_v0  ;;  %4023 = vmatpush3.bf16.msra.mxu1 %v4453_v56 }
 0x252   : > { %4024 = vmatprep.subr.bf16.mxu1 %v4610_v0 }
 0x254   : > { %4001 = vmatpush3.bf16.msra.mxu0 %v4438_v36  ;;  %v4470_v36 = vld [vmem:[#allocation3 + $0x3e8] sm:$0xff]  }
 0x255   : > { %4002 = vmatprep.subr.bf16.mxu0 %v4610_v0  ;;  %4025 = vmatpush3.bf16.msra.mxu1 %v4455_v57 }
 0x256   : > { %4050 = vmatprep.subr.bf16.mxu1 %v4610_v0 }
 0x258   : > { %4003 = vmatpush3.bf16.msra.mxu0 %v4439_v37  ;;  %v4471_v37 = vld [vmem:[#allocation3 + $0x3a0] sm:$0xff]  }
 0x259   : > { %4004 = vmatprep.subr.bf16.mxu0 %v4610_v0 }
 0x25c   : > { %4005 = vmatpush3.bf16.msra.mxu0 %v4440_v38  ;;  %v4472_v38 = vld [vmem:[#allocation3 + $0x3e0] sm:$0xff]  }
 0x25d   : > { %4030 = vmatprep.subr.bf16.mxu0 %v4610_v0 }
 0x25f   : > { %4007 = vmatmul.mubr.bf16.vlgmr.msra.gmra.mxu0 %v1326_v41  ;;  %v4473_v41 = vld [vmem:[#allocation3 + $0x398] sm:$0xff]  }
 0x260   : > { %4046 = vmatprep.mubr.msk.bf16.mxu0 %vm4611_vm0, %v4610_v0  ;;  %4031 = vmatpush3.bf16.msra.mxu0 %v4442_v43  ;;  %v4475_v43 = vld [vmem:[#allocation3 + $0x390] sm:$0xff]  }
 0x261   : > { %4032 = vmatprep.subr.bf16.mxu0 %v4610_v0 }
 0x264   : > { %4033 = vmatpush3.bf16.msra.mxu0 %v4444_v45  ;;  %v4477_v45 = vld [vmem:[#allocation3 + $0x388] sm:$0xff]  }
 0x265   : > { %4034 = vmatprep.subr.bf16.mxu0 %v4610_v0 }
 0x268   : > { %4035 = vmatpush3.bf16.msra.mxu0 %v4446_v47 }
 0x269   : > { %4036 = vmatprep.subr.bf16.mxu0 %v4610_v0 }
 0x26c   : > { %4037 = vmatpush3.bf16.msra.mxu0 %v4448_v49 }
 0x26d   : > { %4038 = vmatprep.subr.bf16.mxu0 %v4610_v0 }
 0x270   : > { %4039 = vmatpush3.bf16.msra.mxu0 %v4450_v50 }
 0x271   : > { %4040 = vmatprep.subr.bf16.mxu0 %v4610_v0 }
 0x274   : > { %4041 = vmatpush3.bf16.msra.mxu0 %v4452_v51 }
 0x275   : > { %4042 = vmatprep.subr.bf16.mxu0 %v4610_v0 }
 0x278   : > { %4043 = vmatpush3.bf16.msra.mxu0 %v4454_v53 }
 0x279   : > { %4044 = vmatprep.subr.bf16.mxu0 %v4610_v0 }
 0x27c   : > { %4045 = vmatpush3.bf16.msra.mxu0 %v4456_v55  ;;  %v3413_v55 = vld [vmem:[%s4998_s2 + $0x3] ss:$0 sm:$0xff] }
 0x27d   : > { %4070 = vmatprep.subr.bf16.mxu0 %v4610_v0 }
 0x2f7   : > { %v1315_v58 = vpop.f32.mrf.mxu1 }
 0x2f9   : > { %v3988_v59 = vpop.f32.mrf.mxu1 }
 0x2fb   : > { %v1318_v60 = vpop.f32.mrf.mxu1 }
 0x2fd   : > { %v3989_v61 = vpop.f32.mrf.mxu1 }
 0x2ff   : > { %v1204_v62 = vpop.f32.mrf.mxu0 }
 0x300   : > { %v1211_v4 = vadd.f32 %v3388_v3, %v1204_v62 }
 0x301   : > { %v3968_v63 = vpop.f32.mrf.mxu0 }
 0x302   : > { %v1322_v5 = vadd.f32 %v1315_v58, %v1211_v4 }
 0x303   : > { %v1207_v1 = vpop.f32.mrf.mxu0 }
 0x304   : > { %v1212_v6 = vadd.f32 %v3388_v3, %v1207_v1 }
 0x305   : > { %v3969_v2 = vpop.f32.mrf.mxu0 }
 0x306   : > { %v1323_v10 = vadd.f32 %v1318_v60, %v1212_v6  ;;  %v4481_v6 = vld [vmem:[#allocation3 + $0x438] sm:$0xff]  }
 0x31f   : > { %v1426_v7 = vpop.f32.mrf.mxu0 }
 0x320   : > { %v1433_v8 = vadd.f32 %v1426_v7, %v1322_v5 }
 0x321   : > { %v4008_v9 = vpop.f32.mrf.mxu0 }
 0x322   : > { %v1435_v11 = vmax.f32 %v1433_v8, 0.0  ;;  %v4482_v8 = vld [vmem:[#allocation3 + $0x430] sm:$0xff]   ;;  %v4483_v9 = vld [vmem:[#allocation3 + $0x428] sm:$0xff]  }
 0x323   : > { %v1429_v12 = vpop.f32.mrf.mxu0 }
 0x324   : > { %1437 = vst [vmem:[#allocation2 + $0x4] sm:$0xff] %v1435_v11  ;;  %v1434_v13 = vadd.f32 %v1429_v12, %v1323_v10  ;;  %v4484_v10 = vld [vmem:[#allocation3 + $0x420] sm:$0xff]   ;;  %v4486_v12 = vld [vmem:[#allocation3 + $0x410] sm:$0xff]  }
 0x325   : > { %v4009_v14 = vpop.f32.mrf.mxu0 }
 0x326   : > { %v1436_v15 = vmax.f32 %v1434_v13, 0.0  ;;  %v4487_v13 = vld [vmem:[#allocation3 + $0x408] sm:$0xff]   ;;  %v4488_v14 = vld [vmem:[#allocation3 + $0x400] sm:$0xff]  }
 0x328   : > { %1438 = vst [vmem:[#allocation2 + $0xc] sm:$0xff] %v1436_v15  ;;  %v1557_v16 = vpack.c.bf16 %v1436_v15, %v1435_v11  ;;  %v4485_v11 = vld [vmem:[#allocation3 + $0x418] sm:$0xff]  }
 0x32a   : > { %4047 = vmatmul.mubr.bf16.vlgmr.msra.gmra.mxu0 %v1557_v16 }
 0x32b   : > { %4086 = vmatprep.mubr.msk.bf16.mxu0 %vm4611_vm0, %v4610_v0  ;;  %v1444_v17 = vld [vmem:[#allocation2 + $0x3] sm:$0xff]  ;;  %4071 = vmatpush3.bf16.msra.mxu0 %v4465_v31 }
 0x32c   : > { %4072 = vmatprep.subr.bf16.mxu0 %v4610_v0 }
 0x32f   : > { %v1445_v18 = vld [vmem:[#allocation2 + $0xb] sm:$0xff]  ;;  %4073 = vmatpush3.bf16.msra.mxu0 %v4467_v33 }
 0x330   : > { %v1446_v20 = vpack.c.bf16 %v1445_v18, %v1444_v17  ;;  %v1666_v28 = vld [vmem:[#allocation2 + $0x5] sm:$0xff]  ;;  %v1667_v29 = vld [vmem:[#allocation2 + $0xd] sm:$0xff]  ;;  %4074 = vmatprep.subr.bf16.mxu0 %v4610_v0 }
 0x331   : > { %v1668_v30 = vpack.c.bf16 %v1667_v29, %v1666_v28  ;;  %v4489_v18 = vld [vmem:[#allocation3 + $0x478] sm:$0xff]   ;;  %v4501_v28 = vld [vmem:[#allocation3 + $0x4a8] sm:$0xff]   ;;  %v4503_v29 = vld [vmem:[#allocation3 + $0x4a0] sm:$0xff]  }
 0x332   : > { %4027 = vmatmul.mubr.bf16.vlgmr.msra.gmra.mxu1 %v1446_v20  ;;  %v4491_v20 = vld [vmem:[#allocation3 + $0x468] sm:$0xff]  }
 0x333   : > { %4051 = vmatpush3.bf16.msra.mxu1 %v4457_v19  ;;  %4066 = vmatprep.mubr.msk.bf16.mxu1 %vm4611_vm0, %v4610_v0  ;;  %v4490_v19 = vld [vmem:[#allocation3 + $0x470] sm:$0xff]  }
 0x334   : > { %4052 = vmatprep.subr.bf16.mxu1 %v4610_v0  ;;  %4075 = vmatpush3.bf16.msra.mxu0 %v4469_v35 }
 0x335   : > { %4076 = vmatprep.subr.bf16.mxu0 %v4610_v0 }
 0x337   : > { %4053 = vmatpush3.bf16.msra.mxu1 %v4458_v21  ;;  %v4492_v21 = vld [vmem:[#allocation3 + $0x460] sm:$0xff]  }
 0x338   : > { %4054 = vmatprep.subr.bf16.mxu1 %v4610_v0  ;;  %4077 = vmatpush3.bf16.msra.mxu0 %v4471_v37 }
 0x339   : > { %4078 = vmatprep.subr.bf16.mxu0 %v4610_v0 }
 0x33b   : > { %4055 = vmatpush3.bf16.msra.mxu1 %v4459_v22  ;;  %v4493_v22 = vld [vmem:[#allocation3 + $0x458] sm:$0xff]  }
 0x33c   : > { %4056 = vmatprep.subr.bf16.mxu1 %v4610_v0  ;;  %4079 = vmatpush3.bf16.msra.mxu0 %v4473_v41 }
 0x33d   : > { %4080 = vmatprep.subr.bf16.mxu0 %v4610_v0 }
 0x33f   : > { %4057 = vmatpush3.bf16.msra.mxu1 %v4460_v23  ;;  %v4494_v23 = vld [vmem:[#allocation3 + $0x450] sm:$0xff]  }
 0x340   : > { %4058 = vmatprep.subr.bf16.mxu1 %v4610_v0  ;;  %4081 = vmatpush3.bf16.msra.mxu0 %v4475_v43 }
 0x341   : > { %4082 = vmatprep.subr.bf16.mxu0 %v4610_v0 }
 0x343   : > { %4059 = vmatpush3.bf16.msra.mxu1 %v4461_v24  ;;  %v4495_v24 = vld [vmem:[#allocation3 + $0x448] sm:$0xff]  }
 0x344   : > { %4060 = vmatprep.subr.bf16.mxu1 %v4610_v0  ;;  %4083 = vmatpush3.bf16.msra.mxu0 %v4477_v45 }
 0x345   : > { %4084 = vmatprep.subr.bf16.mxu0 %v4610_v0 }
 0x347   : > { %4061 = vmatpush3.bf16.msra.mxu1 %v4462_v25  ;;  %v4496_v25 = vld [vmem:[#allocation3 + $0x440] sm:$0xff]  }
 0x348   : > { %4062 = vmatprep.subr.bf16.mxu1 %v4610_v0  ;;  %4085 = vmatpush3.bf16.msra.mxu0 %v4479_v46 }
 0x349   : > { %4110 = vmatprep.subr.bf16.mxu0 %v4610_v0 }
 0x34b   : > { %4063 = vmatpush3.bf16.msra.mxu1 %v4463_v26  ;;  %v4497_v26 = vld [vmem:[#allocation3 + $0x4b8] sm:$0xff]  }
 0x34c   : > { %4064 = vmatprep.subr.bf16.mxu1 %v4610_v0 }
 0x34f   : > { %4065 = vmatpush3.bf16.msra.mxu1 %v4464_v27  ;;  %v4499_v27 = vld [vmem:[#allocation3 + $0x4b0] sm:$0xff]  }
 0x350   : > { %4090 = vmatprep.subr.bf16.mxu1 %v4610_v0 }
 0x352   : > { %4067 = vmatmul.mubr.bf16.vlgmr.msra.gmra.mxu1 %v1668_v30 }
 0x353   : > { %4106 = vmatprep.mubr.msk.bf16.mxu1 %vm4611_vm0, %v4610_v0  ;;  %4091 = vmatpush3.bf16.msra.mxu1 %v4466_v32 }
 0x354   : > { %4092 = vmatprep.subr.bf16.mxu1 %v4610_v0 }
 0x357   : > { %4093 = vmatpush3.bf16.msra.mxu1 %v4468_v34 }
 0x358   : > { %4094 = vmatprep.subr.bf16.mxu1 %v4610_v0 }
 0x35b   : > { %4095 = vmatpush3.bf16.msra.mxu1 %v4470_v36 }
 0x35c   : > { %4096 = vmatprep.subr.bf16.mxu1 %v4610_v0 }
 0x35f   : > { %4097 = vmatpush3.bf16.msra.mxu1 %v4472_v38  ;;  %v3438_v38 = vld [vmem:[%s4998_s2 + $0x4] ss:$0 sm:$0xff] }
 0x360   : > { %4098 = vmatprep.subr.bf16.mxu1 %v4610_v0 }
 0x363   : > { %4099 = vmatpush3.bf16.msra.mxu1 %v4474_v39 }
 0x364   : > { %4100 = vmatprep.subr.bf16.mxu1 %v4610_v0 }
 0x367   : > { %4101 = vmatpush3.bf16.msra.mxu1 %v4476_v40 }
 0x368   : > { %4102 = vmatprep.subr.bf16.mxu1 %v4610_v0 }
 0x36b   : > { %4103 = vmatpush3.bf16.msra.mxu1 %v4478_v42 }
 0x36c   : > { %4104 = vmatprep.subr.bf16.mxu1 %v4610_v0 }
 0x36f   : > { %4105 = vmatpush3.bf16.msra.mxu1 %v4480_v44 }
 0x370   : > { %4130 = vmatprep.subr.bf16.mxu1 %v4610_v0 }
 0x3ea   : > { %v1657_v47 = vpop.f32.mrf.mxu0 }
 0x3ec   : > { %v4048_v48 = vpop.f32.mrf.mxu0 }
 0x3ee   : > { %v1660_v49 = vpop.f32.mrf.mxu0 }
 0x3f0   : > { %v4049_v50 = vpop.f32.mrf.mxu0 }
 0x3f2   : > { %v1546_v51 = vpop.f32.mrf.mxu1 }
 0x3f3   : > { %v1553_v56 = vadd.f32 %v3413_v55, %v1546_v51  ;;  %v4498_v51 = vld [vmem:[#allocation3 + $0x4f8] sm:$0xff]  }
 0x3f4   : > { %v4028_v52 = vpop.f32.mrf.mxu1 }
 0x3f5   : > { %v1664_v57 = vadd.f32 %v1657_v47, %v1553_v56  ;;  %v4505_v56 = vld [vmem:[#allocation3 + $0x498] sm:$0xff]  }
 0x3f6   : > { %v1549_v53 = vpop.f32.mrf.mxu1 }
 0x3f7   : > { %v1554_v58 = vadd.f32 %v3413_v55, %v1549_v53  ;;  %v4500_v53 = vld [vmem:[#allocation3 + $0x4f0] sm:$0xff]   ;;  %v4504_v55 = vld [vmem:[#allocation3 + $0x4e0] sm:$0xff]  }
 0x3f8   : > { %v4029_v54 = vpop.f32.mrf.mxu1 }
 0x3f9   : > { %v1665_v62 = vadd.f32 %v1660_v49, %v1554_v58  ;;  %v4502_v54 = vld [vmem:[#allocation3 + $0x4e8] sm:$0xff]   ;;  %v4507_v58 = vld [vmem:[#allocation3 + $0x490] sm:$0xff]  }
 0x412   : > { %v1768_v59 = vpop.f32.mrf.mxu1 }
 0x413   : > { %v1775_v60 = vadd.f32 %v1768_v59, %v1664_v57  ;;  %v4506_v57 = vld [vmem:[#allocation3 + $0x4d8] sm:$0xff]   ;;  %v4508_v59 = vld [vmem:[#allocation3 + $0x4d0] sm:$0xff]  }
 0x414   : > { %v4068_v61 = vpop.f32.mrf.mxu1 }
 0x415   : > { %1777 = vst [vmem:[#allocation2 + $0x4] sm:$0xff] %v1775_v60  ;;  %v4510_v61 = vld [vmem:[#allocation3 + $0x4c8] sm:$0xff]  }
 0x416   : > { %v1771_v63 = vpop.f32.mrf.mxu1 }
 0x417   : > { %v1776_v1 = vadd.f32 %v1771_v63, %v1665_v62  ;;  %v4511_v62 = vld [vmem:[#allocation3 + $0x480] sm:$0xff]  }
 0x418   : > { %v4069_v2 = vpop.f32.mrf.mxu1  ;;  %v4512_v63 = vld [vmem:[#allocation3 + $0x4c0] sm:$0xff]  }
 0x419   : > { %1778 = vst [vmem:[#allocation2 + $0xc] sm:$0xff] %v1776_v1  ;;  %v1897_v3 = vpack.c.bf16 %v1776_v1, %v1775_v60  ;;  %v4509_v60 = vld [vmem:[#allocation3 + $0x488] sm:$0xff]  }
 0x41a   : > { %v3463_v1 = vld [vmem:[%s4998_s2 + $0x5] ss:$0 sm:$0xff] }
 0x41b   : > { %4107 = vmatmul.mubr.bf16.vlgmr.msra.gmra.mxu1 %v1897_v3 }
 0x41c   : > { %4146 = vmatprep.mubr.msk.bf16.mxu1 %vm4611_vm0, %v4610_v0  ;;  %v1784_v4 = vld [vmem:[#allocation2 + $0x3] sm:$0xff]  ;;  %4131 = vmatpush3.bf16.msra.mxu1 %v4489_v18 }
 0x41d   : > { %4132 = vmatprep.subr.bf16.mxu1 %v4610_v0  ;;  %v4517_v18 = vld [vmem:[#allocation3 + $0x528] sm:$0xff]  }
 0x420   : > { %v1785_v5 = vld [vmem:[#allocation2 + $0xb] sm:$0xff]  ;;  %4133 = vmatpush3.bf16.msra.mxu1 %v4490_v19  ;;  %v4518_v19 = vld [vmem:[#allocation3 + $0x568] sm:$0xff]  }
 0x421   : > { %v1786_v7 = vpack.c.bf16 %v1785_v5, %v1784_v4  ;;  %v2006_v15 = vld [vmem:[#allocation2 + $0x5] sm:$0xff]  ;;  %v2007_v16 = vld [vmem:[#allocation2 + $0xd] sm:$0xff]  ;;  %4134 = vmatprep.subr.bf16.mxu1 %v4610_v0 }
 0x422   : > { %v2008_v17 = vpack.c.bf16 %v2007_v16, %v2006_v15  ;;  %v4515_v16 = vld [vmem:[#allocation3 + $0x530] sm:$0xff]  }
 0x423   : > { %4087 = vmatmul.mubr.bf16.vlgmr.msra.gmra.mxu0 %v1786_v7 }
 0x424   : > { %4111 = vmatpush3.bf16.msra.mxu0 %v4481_v6  ;;  %4126 = vmatprep.mubr.msk.bf16.mxu0 %vm4611_vm0, %v4610_v0 }
 0x425   : > { %4112 = vmatprep.subr.bf16.mxu0 %v4610_v0  ;;  %4135 = vmatpush3.bf16.msra.mxu1 %v4491_v20  ;;  %v4519_v20 = vld [vmem:[#allocation3 + $0x520] sm:$0xff]  }
 0x426   : > { %4136 = vmatprep.subr.bf16.mxu1 %v4610_v0 }
 0x428   : > { %4113 = vmatpush3.bf16.msra.mxu0 %v4482_v8 }
 0x429   : > { %4114 = vmatprep.subr.bf16.mxu0 %v4610_v0  ;;  %4137 = vmatpush3.bf16.msra.mxu1 %v4492_v21  ;;  %v4520_v21 = vld [vmem:[#allocation3 + $0x560] sm:$0xff]  }
 0x42a   : > { %4138 = vmatprep.subr.bf16.mxu1 %v4610_v0 }
 0x42c   : > { %4115 = vmatpush3.bf16.msra.mxu0 %v4483_v9  ;;  %v4513_v9 = vld [vmem:[#allocation3 + $0x538] sm:$0xff]  }
 0x42d   : > { %4116 = vmatprep.subr.bf16.mxu0 %v4610_v0  ;;  %4139 = vmatpush3.bf16.msra.mxu1 %v4493_v22  ;;  %v4521_v22 = vld [vmem:[#allocation3 + $0x518] sm:$0xff]  }
 0x42e   : > { %4140 = vmatprep.subr.bf16.mxu1 %v4610_v0 }
 0x430   : > { %4117 = vmatpush3.bf16.msra.mxu0 %v4484_v10  ;;  %v4514_v10 = vld [vmem:[#allocation3 + $0x578] sm:$0xff]  }
 0x431   : > { %4118 = vmatprep.subr.bf16.mxu0 %v4610_v0  ;;  %4141 = vmatpush3.bf16.msra.mxu1 %v4494_v23  ;;  %v4522_v23 = vld [vmem:[#allocation3 + $0x558] sm:$0xff]  }
 0x432   : > { %4142 = vmatprep.subr.bf16.mxu1 %v4610_v0 }
 0x434   : > { %4119 = vmatpush3.bf16.msra.mxu0 %v4485_v11 }
 0x435   : > { %4120 = vmatprep.subr.bf16.mxu0 %v4610_v0  ;;  %4143 = vmatpush3.bf16.msra.mxu1 %v4495_v24  ;;  %v4523_v24 = vld [vmem:[#allocation3 + $0x510] sm:$0xff]  }
 0x436   : > { %4144 = vmatprep.subr.bf16.mxu1 %v4610_v0 }
 0x438   : > { %4121 = vmatpush3.bf16.msra.mxu0 %v4486_v12 }
 0x439   : > { %4122 = vmatprep.subr.bf16.mxu0 %v4610_v0  ;;  %4145 = vmatpush3.bf16.msra.mxu1 %v4496_v25  ;;  %v4524_v25 = vld [vmem:[#allocation3 + $0x550] sm:$0xff]  }
 0x43a   : > { %4170 = vmatprep.subr.bf16.mxu1 %v4610_v0 }
 0x43c   : > { %4123 = vmatpush3.bf16.msra.mxu0 %v4487_v13 }
 0x43d   : > { %4124 = vmatprep.subr.bf16.mxu0 %v4610_v0 }
 0x440   : > { %4125 = vmatpush3.bf16.msra.mxu0 %v4488_v14 }
 0x441   : > { %4150 = vmatprep.subr.bf16.mxu0 %v4610_v0 }
 0x443   : > { %4127 = vmatmul.mubr.bf16.vlgmr.msra.gmra.mxu0 %v2008_v17  ;;  %v4516_v17 = vld [vmem:[#allocation3 + $0x570] sm:$0xff]  }
 0x444   : > { %4166 = vmatprep.mubr.msk.bf16.mxu0 %vm4611_vm0, %v4610_v0  ;;  %4151 = vmatpush3.bf16.msra.mxu0 %v4497_v26  ;;  %v4525_v26 = vld [vmem:[#allocation3 + $0x508] sm:$0xff]  }
 0x445   : > { %4152 = vmatprep.subr.bf16.mxu0 %v4610_v0 }
 0x448   : > { %4153 = vmatpush3.bf16.msra.mxu0 %v4499_v27  ;;  %v4526_v27 = vld [vmem:[#allocation3 + $0x548] sm:$0xff]  }
 0x449   : > { %4154 = vmatprep.subr.bf16.mxu0 %v4610_v0 }
 0x44c   : > { %4155 = vmatpush3.bf16.msra.mxu0 %v4501_v28  ;;  %v4527_v28 = vld [vmem:[#allocation3 + $0x500] sm:$0xff]  }
 0x44d   : > { %4156 = vmatprep.subr.bf16.mxu0 %v4610_v0 }
 0x450   : > { %4157 = vmatpush3.bf16.msra.mxu0 %v4503_v29  ;;  %v4528_v29 = vld [vmem:[#allocation3 + $0x540] sm:$0xff]  }
 0x451   : > { %4158 = vmatprep.subr.bf16.mxu0 %v4610_v0 }
 0x454   : > { %4159 = vmatpush3.bf16.msra.mxu0 %v4505_v56 }
 0x455   : > { %4160 = vmatprep.subr.bf16.mxu0 %v4610_v0 }
 0x458   : > { %4161 = vmatpush3.bf16.msra.mxu0 %v4507_v58  ;;  %v4547_v58 = vld [vmem:[#allocation3 + $0x630] sm:$0xff]  }
 0x459   : > { %4162 = vmatprep.subr.bf16.mxu0 %v4610_v0 }
 0x45c   : > { %4163 = vmatpush3.bf16.msra.mxu0 %v4509_v60  ;;  %v4549_v60 = vld [vmem:[#allocation3 + $0x628] sm:$0xff]  }
 0x45d   : > { %4164 = vmatprep.subr.bf16.mxu0 %v4610_v0 }
 0x460   : > { %4165 = vmatpush3.bf16.msra.mxu0 %v4511_v62  ;;  %v4551_v62 = vld [vmem:[#allocation3 + $0x620] sm:$0xff]  }
 0x461   : > { %4190 = vmatprep.subr.bf16.mxu0 %v4610_v0 }
 0x4db   : > { %v1997_v30 = vpop.f32.mrf.mxu1 }
 0x4dd   : > { %v4108_v31 = vpop.f32.mrf.mxu1 }
 0x4df   : > { %v2000_v32 = vpop.f32.mrf.mxu1 }
 0x4e1   : > { %v4109_v33 = vpop.f32.mrf.mxu1 }
 0x4e3   : > { %v1886_v34 = vpop.f32.mrf.mxu0 }
 0x4e4   : > { %v1893_v39 = vadd.f32 %v3438_v38, %v1886_v34 }
 0x4e5   : > { %v4088_v35 = vpop.f32.mrf.mxu0 }
 0x4e6   : > { %v2004_v42 = vadd.f32 %v1997_v30, %v1893_v39  ;;  %v4530_v35 = vld [vmem:[#allocation3 + $0x5f8] sm:$0xff]   ;;  %v4532_v39 = vld [vmem:[#allocation3 + $0x5f0] sm:$0xff]  }
 0x4e7   : > { %v1889_v36 = vpop.f32.mrf.mxu0 }
 0x4e8   : > { %v1894_v40 = vadd.f32 %v3438_v38, %v1889_v36  ;;  %v4531_v38 = vld [vmem:[#allocation3 + $0x5b0] sm:$0xff]  }
 0x4e9   : > { %v4089_v37 = vpop.f32.mrf.mxu0 }
 0x4ea   : > { %v2005_v44 = vadd.f32 %v2000_v32, %v1894_v40  ;;  %v4529_v32 = vld [vmem:[#allocation3 + $0x5b8] sm:$0xff]   ;;  %v4533_v40 = vld [vmem:[#allocation3 + $0x5a8] sm:$0xff]  }
 0x503   : > { %v2108_v41 = vpop.f32.mrf.mxu0 }
 0x504   : > { %v2115_v45 = vadd.f32 %v2108_v41, %v2004_v42  ;;  %v4534_v41 = vld [vmem:[#allocation3 + $0x5e8] sm:$0xff]   ;;  %v4535_v42 = vld [vmem:[#allocation3 + $0x5a0] sm:$0xff]  }
 0x505   : > { %v4128_v43 = vpop.f32.mrf.mxu0 }
 0x506   : > { %v2117_v49 = vmax.f32 %v2115_v45, 0.0  ;;  %v4536_v43 = vld [vmem:[#allocation3 + $0x5e0] sm:$0xff]   ;;  %v4538_v45 = vld [vmem:[#allocation3 + $0x5d8] sm:$0xff]  }
 0x507   : > { %v2111_v46 = vpop.f32.mrf.mxu0 }
 0x508   : > { %v2116_v47 = vadd.f32 %v2111_v46, %v2005_v44  ;;  %v4537_v44 = vld [vmem:[#allocation3 + $0x598] sm:$0xff]   ;;  %v4539_v46 = vld [vmem:[#allocation3 + $0x590] sm:$0xff]  }
 0x509   : > { %v4129_v48 = vpop.f32.mrf.mxu0 }
 0x50a   : > { %v2118_v50 = vmax.f32 %v2116_v47, 0.0  ;;  %v4540_v47 = vld [vmem:[#allocation3 + $0x5d0] sm:$0xff]   ;;  %v4541_v48 = vld [vmem:[#allocation3 + $0x588] sm:$0xff]  }
 0x50c   : > { %v2124_v52 = vpack.c.bf16 %v2118_v50, %v2117_v49  ;;  %v4542_v49 = vld [vmem:[#allocation3 + $0x5c8] sm:$0xff]   ;;  %v4543_v50 = vld [vmem:[#allocation3 + $0x580] sm:$0xff]  }
 0x50e   : > { %4147 = vmatmul.mubr.bf16.vlgmr.msra.gmra.mxu1 %v2124_v52 }
 0x50f   : > { %4171 = vmatpush3.bf16.msra.mxu1 %v4498_v51  ;;  %4186 = vmatprep.mubr.msk.bf16.mxu1 %vm4611_vm0, %v4610_v0  ;;  %v4544_v51 = vld [vmem:[#allocation3 + $0x5c0] sm:$0xff]  }
 0x510   : > { %4172 = vmatprep.subr.bf16.mxu1 %v4610_v0 }
 0x513   : > { %4173 = vmatpush3.bf16.msra.mxu1 %v4500_v53 }
 0x514   : > { %4174 = vmatprep.subr.bf16.mxu1 %v4610_v0 }
 0x517   : > { %4175 = vmatpush3.bf16.msra.mxu1 %v4502_v54  ;;  %v4545_v54 = vld [vmem:[#allocation3 + $0x638] sm:$0xff]  }
 0x518   : > { %4176 = vmatprep.subr.bf16.mxu1 %v4610_v0 }
 0x51b   : > { %4177 = vmatpush3.bf16.msra.mxu1 %v4504_v55  ;;  %v4546_v55 = vld [vmem:[#allocation3 + $0x678] sm:$0xff]  }
 0x51c   : > { %4178 = vmatprep.subr.bf16.mxu1 %v4610_v0 }
 0x51f   : > { %4179 = vmatpush3.bf16.msra.mxu1 %v4506_v57 }
 0x520   : > { %4180 = vmatprep.subr.bf16.mxu1 %v4610_v0 }
 0x523   : > { %4181 = vmatpush3.bf16.msra.mxu1 %v4508_v59  ;;  %v4548_v59 = vld [vmem:[#allocation3 + $0x670] sm:$0xff]  }
 0x524   : > { %4182 = vmatprep.subr.bf16.mxu1 %v4610_v0 }
 0x527   : > { %4183 = vmatpush3.bf16.msra.mxu1 %v4510_v61  ;;  %v4550_v61 = vld [vmem:[#allocation3 + $0x668] sm:$0xff]  }
 0x528   : > { %4184 = vmatprep.subr.bf16.mxu1 %v4610_v0 }
 0x52b   : > { %4185 = vmatpush3.bf16.msra.mxu1 %v4512_v63  ;;  %v4552_v63 = vld [vmem:[#allocation3 + $0x660] sm:$0xff]  }
 0x52c   : > { %4210 = vmatprep.subr.bf16.mxu1 %v4610_v0 }
 0x5ce   : > { %v2224_v2 = vpop.f32.mrf.mxu1 }
 0x5cf   : > { %v4903_v3 = vadd.f32 %v3463_v1, %v2224_v2  ;;  %v4554_v2 = vld [vmem:[#allocation3 + $0x658] sm:$0xff]  }
 0x5d0   : > { %v4148_v4 = vpop.f32.mrf.mxu1 }
 0x5d1   : > { %2233 = vst [vmem:[#allocation2 + $0x4] sm:$0xff] %v4903_v3  ;;  %v4555_v4 = vld [vmem:[#allocation3 + $0x610] sm:$0xff]  }
 0x5d2   : > { %v2227_v5 = vpop.f32.mrf.mxu1 }
 0x5d3   : > { %v4906_v6 = vadd.f32 %v3463_v1, %v2227_v5  ;;  %v4553_v1 = vld [vmem:[#allocation3 + $0x618] sm:$0xff]   ;;  %v4556_v5 = vld [vmem:[#allocation3 + $0x650] sm:$0xff]  }
 0x5d4   : > { %v4149_v7 = vpop.f32.mrf.mxu1 }
 0x5d5   : > { %2234 = vst [vmem:[#allocation2 + $0xc] sm:$0xff] %v4906_v6  ;;  %v2686_v56 = vpack.c.bf16 %v4906_v6, %v4903_v3  ;;  %v4557_v7 = vld [vmem:[#allocation3 + $0x608] sm:$0xff]  }
 0x5d8   : > { %v2240_v8 = vld [vmem:[#allocation2] sm:$0xff] }
 0x5d9   : > { %v2351_v12 = vld [vmem:[#allocation2 + $0x1] sm:$0xff] }
 0x5da   : > { %v2462_v33 = vld [vmem:[#allocation2 + $0x2] sm:$0xff] }
 0x5db   : > { %v2573_v34 = vld [vmem:[#allocation2 + $0x3] sm:$0xff] }
 0x5dc   : > { %v4909_v11 = vld [vmem:[#allocation2 + $0x8] sm:$0xff] }
 0x5dd   : > { %v2352_v13 = vld [vmem:[#allocation2 + $0x9] sm:$0xff]  ;;  %v2242_v14 = vpack.c.bf16 %v4909_v11, %v2240_v8  ;;  %v4558_v8 = vld [vmem:[#allocation3 + $0x648] sm:$0xff]  }
 0x5de   : > { %v2353_v15 = vpack.c.bf16 %v2352_v13, %v2351_v12  ;;  %v2463_v30 = vld [vmem:[#allocation2 + $0xa] sm:$0xff] }
 0x5df   : > { %4167 = vmatmul.mubr.bf16.vlgmr.msra.gmra.mxu0 %v2242_v14  ;;  %v2574_v31 = vld [vmem:[#allocation2 + $0xb] sm:$0xff]  ;;  %v2464_v36 = vpack.c.bf16 %v2463_v30, %v2462_v33 }
 0x5e0   : > { %4187 = vmatmul.mubr.bf16.vlgmr.msra.gmra.mxu1 %v2353_v15  ;;  %4191 = vmatpush3.bf16.msra.mxu0 %v4513_v9  ;;  %v2575_v37 = vpack.c.bf16 %v2574_v31, %v2573_v34  ;;  %v2795_v52 = vld [vmem:[#allocation2 + $0x5] sm:$0xff]  ;;  %v2796_v53 = vld [vmem:[#allocation2 + $0xd] sm:$0xff]  ;;  %v4559_v9 = vld [vmem:[#allocation3 + $0x600] sm:$0xff]  }
 0x5e1   : > { %4211 = vmatpush3.bf16.msra.mxu1 %v4514_v10  ;;  %4192 = vmatprep.subr.bf16.mxu0 %v4610_v0  ;;  %v2797_v57 = vpack.c.bf16 %v2796_v53, %v2795_v52  ;;  %v4560_v10 = vld [vmem:[#allocation3 + $0x640] sm:$0xff]   ;;  %v2906_v12 = vld [vmem:[#allocation2 + $0x6] sm:$0xff]  ;;  %v2907_v13 = vld [vmem:[#allocation2 + $0xe] sm:$0xff] }
 0x5e2   : > { %4212 = vmatprep.subr.bf16.mxu1 %v4610_v0  ;;  %4206 = vmatprep.mubr.msk.bf16.mxu0 %vm4611_vm0, %v4610_v0  ;;  %v3017_v14 = vld [vmem:[#allocation2 + $0x7] sm:$0xff]  ;;  %v3018_v15 = vld [vmem:[#allocation2 + $0xf] sm:$0xff] }
 0x5e3   : > { %4226 = vmatprep.mubr.msk.bf16.mxu1 %vm4611_vm0, %v4610_v0 }
 0x5e4   : > { %4193 = vmatpush3.bf16.msra.mxu0 %v4515_v16  ;;  %v4561_v16 = vld [vmem:[#allocation3 + $0x6b8] sm:$0xff]  }
 0x5e5   : > { %4213 = vmatpush3.bf16.msra.mxu1 %v4516_v17  ;;  %4194 = vmatprep.subr.bf16.mxu0 %v4610_v0  ;;  %v2908_v17 = vpack.c.bf16 %v2907_v13, %v2906_v12 }
 0x5e6   : > { %4214 = vmatprep.subr.bf16.mxu1 %v4610_v0 }
 0x5e8   : > { %4195 = vmatpush3.bf16.msra.mxu0 %v4517_v18  ;;  %v3019_v18 = vpack.c.bf16 %v3018_v15, %v3017_v14 }
 0x5e9   : > { %4215 = vmatpush3.bf16.msra.mxu1 %v4518_v19  ;;  %4196 = vmatprep.subr.bf16.mxu0 %v4610_v0  ;;  %v4562_v19 = vld [vmem:[#allocation3 + $0x6b0] sm:$0xff]  }
 0x5ea   : > { %4216 = vmatprep.subr.bf16.mxu1 %v4610_v0 }
 0x5ec   : > { %4197 = vmatpush3.bf16.msra.mxu0 %v4519_v20  ;;  %v4563_v20 = vld [vmem:[#allocation3 + $0x6a8] sm:$0xff]  }
 0x5ed   : > { %4217 = vmatpush3.bf16.msra.mxu1 %v4520_v21  ;;  %4198 = vmatprep.subr.bf16.mxu0 %v4610_v0  ;;  %v4564_v21 = vld [vmem:[#allocation3 + $0x6a0] sm:$0xff]  }
 0x5ee   : > { %4218 = vmatprep.subr.bf16.mxu1 %v4610_v0 }
 0x5f0   : > { %4199 = vmatpush3.bf16.msra.mxu0 %v4521_v22  ;;  %v4565_v22 = vld [vmem:[#allocation3 + $0x698] sm:$0xff]  }
 0x5f1   : > { %4219 = vmatpush3.bf16.msra.mxu1 %v4522_v23  ;;  %4200 = vmatprep.subr.bf16.mxu0 %v4610_v0  ;;  %v4566_v23 = vld [vmem:[#allocation3 + $0x690] sm:$0xff]  }
 0x5f2   : > { %4220 = vmatprep.subr.bf16.mxu1 %v4610_v0 }
 0x5f4   : > { %4201 = vmatpush3.bf16.msra.mxu0 %v4523_v24  ;;  %v4567_v24 = vld [vmem:[#allocation3 + $0x688] sm:$0xff]  }
 0x5f5   : > { %4221 = vmatpush3.bf16.msra.mxu1 %v4524_v25  ;;  %4202 = vmatprep.subr.bf16.mxu0 %v4610_v0  ;;  %v4568_v25 = vld [vmem:[#allocation3 + $0x680] sm:$0xff]  }
 0x5f6   : > { %4222 = vmatprep.subr.bf16.mxu1 %v4610_v0 }
 0x5f8   : > { %4203 = vmatpush3.bf16.msra.mxu0 %v4525_v26  ;;  %v3129_v26 = vld [vmem:[#allocation2 + $0x10] sm:$0xff] }
 0x5f9   : > { %4223 = vmatpush3.bf16.msra.mxu1 %v4526_v27  ;;  %4204 = vmatprep.subr.bf16.mxu0 %v4610_v0  ;;  %v3130_v27 = vpack.c.bf16 %v3129_v26, %v4909_v11 }
 0x5fa   : > { %4224 = vmatprep.subr.bf16.mxu1 %v4610_v0 }
 0x5fc   : > { %4205 = vmatpush3.bf16.msra.mxu0 %v4527_v28  ;;  %v3472_v28 = vld [vmem:[%s4998_s2 + $0x6] ss:$0 sm:$0xff] }
 0x5fd   : > { %4225 = vmatpush3.bf16.msra.mxu1 %v4528_v29  ;;  %4230 = vmatprep.subr.bf16.mxu0 %v4610_v0 }
 0x5fe   : > { %4250 = vmatprep.subr.bf16.mxu1 %v4610_v0 }
 0x5ff   : > { %4207 = vmatmul.mubr.bf16.vlgmr.msra.gmra.mxu0 %v2464_v36 }
 0x600   : > { %4227 = vmatmul.mubr.bf16.vlgmr.msra.gmra.mxu1 %v2575_v37  ;;  %4231 = vmatpush3.bf16.msra.mxu0 %v4529_v32 }
 0x601   : > { %4251 = vmatpush3.bf16.msra.mxu1 %v4530_v35  ;;  %4232 = vmatprep.subr.bf16.mxu0 %v4610_v0 }
 0x602   : > { %4252 = vmatprep.subr.bf16.mxu1 %v4610_v0  ;;  %4246 = vmatprep.mubr.msk.bf16.mxu0 %vm4611_vm0, %v4610_v0 }
 0x603   : > { %4266 = vmatprep.mubr.msk.bf16.mxu1 %vm4611_vm0, %v4610_v0 }
 0x604   : > { %4233 = vmatpush3.bf16.msra.mxu0 %v4531_v38 }
 0x605   : > { %4253 = vmatpush3.bf16.msra.mxu1 %v4532_v39  ;;  %4234 = vmatprep.subr.bf16.mxu0 %v4610_v0 }
 0x606   : > { %4254 = vmatprep.subr.bf16.mxu1 %v4610_v0 }
 0x608   : > { %4235 = vmatpush3.bf16.msra.mxu0 %v4533_v40 }
 0x609   : > { %4255 = vmatpush3.bf16.msra.mxu1 %v4534_v41  ;;  %4236 = vmatprep.subr.bf16.mxu0 %v4610_v0 }
 0x60a   : > { %4256 = vmatprep.subr.bf16.mxu1 %v4610_v0 }
 0x60c   : > { %4237 = vmatpush3.bf16.msra.mxu0 %v4535_v42 }
 0x60d   : > { %4257 = vmatpush3.bf16.msra.mxu1 %v4536_v43  ;;  %4238 = vmatprep.subr.bf16.mxu0 %v4610_v0 }
 0x60e   : > { %4258 = vmatprep.subr.bf16.mxu1 %v4610_v0 }
 0x610   : > { %4239 = vmatpush3.bf16.msra.mxu0 %v4537_v44 }
 0x611   : > { %4259 = vmatpush3.bf16.msra.mxu1 %v4538_v45  ;;  %4240 = vmatprep.subr.bf16.mxu0 %v4610_v0 }
 0x612   : > { %4260 = vmatprep.subr.bf16.mxu1 %v4610_v0 }
 0x614   : > { %4241 = vmatpush3.bf16.msra.mxu0 %v4539_v46 }
 0x615   : > { %4261 = vmatpush3.bf16.msra.mxu1 %v4540_v47  ;;  %4242 = vmatprep.subr.bf16.mxu0 %v4610_v0 }
 0x616   : > { %4262 = vmatprep.subr.bf16.mxu1 %v4610_v0 }
 0x618   : > { %4243 = vmatpush3.bf16.msra.mxu0 %v4541_v48 }
 0x619   : > { %4263 = vmatpush3.bf16.msra.mxu1 %v4542_v49  ;;  %4244 = vmatprep.subr.bf16.mxu0 %v4610_v0 }
 0x61a   : > { %4264 = vmatprep.subr.bf16.mxu1 %v4610_v0 }
 0x61c   : > { %4245 = vmatpush3.bf16.msra.mxu0 %v4543_v50 }
 0x61d   : > { %4265 = vmatpush3.bf16.msra.mxu1 %v4544_v51  ;;  %4270 = vmatprep.subr.bf16.mxu0 %v4610_v0 }
 0x61e   : > { %4290 = vmatprep.subr.bf16.mxu1 %v4610_v0 }
 0x61f   : > { %4247 = vmatmul.mubr.bf16.vlgmr.msra.gmra.mxu0 %v2686_v56 }
 0x620   : > { %4267 = vmatmul.mubr.bf16.vlgmr.msra.gmra.mxu1 %v2797_v57  ;;  %4271 = vmatpush3.bf16.msra.mxu0 %v4545_v54 }
 0x621   : > { %4291 = vmatpush3.bf16.msra.mxu1 %v4546_v55  ;;  %4272 = vmatprep.subr.bf16.mxu0 %v4610_v0 }
 0x622   : > { %4292 = vmatprep.subr.bf16.mxu1 %v4610_v0  ;;  %4286 = vmatprep.mubr.msk.bf16.mxu0 %vm4611_vm0, %v4610_v0 }
 0x623   : > { %4306 = vmatprep.mubr.msk.bf16.mxu1 %vm4611_vm0, %v4610_v0 }
 0x624   : > { %4273 = vmatpush3.bf16.msra.mxu0 %v4547_v58 }
 0x625   : > { %4293 = vmatpush3.bf16.msra.mxu1 %v4548_v59  ;;  %4274 = vmatprep.subr.bf16.mxu0 %v4610_v0 }
 0x626   : > { %4294 = vmatprep.subr.bf16.mxu1 %v4610_v0 }
 0x628   : > { %4275 = vmatpush3.bf16.msra.mxu0 %v4549_v60 }
 0x629   : > { %4295 = vmatpush3.bf16.msra.mxu1 %v4550_v61  ;;  %4276 = vmatprep.subr.bf16.mxu0 %v4610_v0 }
 0x62a   : > { %4296 = vmatprep.subr.bf16.mxu1 %v4610_v0 }
 0x62c   : > { %4277 = vmatpush3.bf16.msra.mxu0 %v4551_v62 }
 0x62d   : > { %4297 = vmatpush3.bf16.msra.mxu1 %v4552_v63  ;;  %4278 = vmatprep.subr.bf16.mxu0 %v4610_v0 }
 0x62e   : > { %4298 = vmatprep.subr.bf16.mxu1 %v4610_v0 }
 0x630   : > { %4279 = vmatpush3.bf16.msra.mxu0 %v4553_v1 }
 0x631   : > { %4299 = vmatpush3.bf16.msra.mxu1 %v4554_v2  ;;  %4280 = vmatprep.subr.bf16.mxu0 %v4610_v0 }
 0x632   : > { %4300 = vmatprep.subr.bf16.mxu1 %v4610_v0 }
 0x634   : > { %4281 = vmatpush3.bf16.msra.mxu0 %v4555_v4 }
 0x635   : > { %4301 = vmatpush3.bf16.msra.mxu1 %v4556_v5  ;;  %4282 = vmatprep.subr.bf16.mxu0 %v4610_v0 }
 0x636   : > { %4302 = vmatprep.subr.bf16.mxu1 %v4610_v0 }
 0x638   : > { %4283 = vmatpush3.bf16.msra.mxu0 %v4557_v7 }
 0x639   : > { %4303 = vmatpush3.bf16.msra.mxu1 %v4558_v8  ;;  %4284 = vmatprep.subr.bf16.mxu0 %v4610_v0 }
 0x63a   : > { %4304 = vmatprep.subr.bf16.mxu1 %v4610_v0 }
 0x63c   : > { %4285 = vmatpush3.bf16.msra.mxu0 %v4559_v9 }
 0x63d   : > { %4305 = vmatpush3.bf16.msra.mxu1 %v4560_v10  ;;  %4310 = vmatprep.subr.bf16.mxu0 %v4610_v0 }
 0x63f   : > { %4287 = vmatmul.mubr.bf16.vlgmr.msra.gmra.mxu0 %v2908_v17 }
 0x640   : > { %4307 = vmatmul.mubr.bf16.vlgmr.msra.gmra.mxu1 %v3019_v18  ;;  %4311 = vmatpush3.bf16.msra.mxu0 %v4561_v16 }
 0x641   : > { %4326 = vmatprep.mubr.msk.bf16.mxu0 %vm4611_vm0, %v4610_v0  ;;  %4312 = vmatprep.subr.bf16.mxu0 %v4610_v0 }
 0x644   : > { %4313 = vmatpush3.bf16.msra.mxu0 %v4562_v19 }
 0x645   : > { %4314 = vmatprep.subr.bf16.mxu0 %v4610_v0 }
 0x648   : > { %4315 = vmatpush3.bf16.msra.mxu0 %v4563_v20 }
 0x649   : > { %4316 = vmatprep.subr.bf16.mxu0 %v4610_v0 }
 0x64c   : > { %4317 = vmatpush3.bf16.msra.mxu0 %v4564_v21 }
 0x64d   : > { %4318 = vmatprep.subr.bf16.mxu0 %v4610_v0 }
 0x650   : > { %4319 = vmatpush3.bf16.msra.mxu0 %v4565_v22 }
 0x651   : > { %4320 = vmatprep.subr.bf16.mxu0 %v4610_v0 }
 0x654   : > { %4321 = vmatpush3.bf16.msra.mxu0 %v4566_v23 }
 0x655   : > { %4322 = vmatprep.subr.bf16.mxu0 %v4610_v0 }
 0x658   : > { %4323 = vmatpush3.bf16.msra.mxu0 %v4567_v24 }
 0x659   : > { %4324 = vmatprep.subr.bf16.mxu0 %v4610_v0 }
 0x65c   : > { %4325 = vmatpush3.bf16.msra.mxu0 %v4568_v25 }
 0x65f   : > { %4327 = vmatmul.mubr.bf16.vlgmr.msra.gmra.mxu0 %v3130_v27 }
 0x69f   : > { %v2342_v29 = vpop.f32.mrf.mxu0 }
 0x6a0   : > { %v2453_v30 = vpop.f32.mrf.mxu1  ;;  %v2349_v31 = vadd.f32 %v3472_v28, %v2342_v29 }
 0x6a1   : > { %v4168_v32 = vpop.f32.mrf.mxu0 }
 0x6a2   : > { %v4188_v33 = vpop.f32.mrf.mxu1  ;;  %v2460_v34 = vadd.f32 %v2453_v30, %v2349_v31 }
 0x6a3   : > { %v2345_v35 = vpop.f32.mrf.mxu0 }
 0x6a4   : > { %v2456_v36 = vpop.f32.mrf.mxu1  ;;  %v2350_v37 = vadd.f32 %v3472_v28, %v2345_v35 }
 0x6a5   : > { %v4169_v38 = vpop.f32.mrf.mxu0 }
 0x6a6   : > { %v4189_v0 = vpop.f32.mrf.mxu1  ;;  %v2461_v39 = vadd.f32 %v2456_v36, %v2350_v37 }
 0x6bf   : > { %v2564_v40 = vpop.f32.mrf.mxu0 }
 0x6c0   : > { %v2675_v41 = vpop.f32.mrf.mxu1  ;;  %v2571_v11 = vadd.f32 %v2564_v40, %v2460_v34 }
 0x6c1   : > { %v4208_v42 = vpop.f32.mrf.mxu0 }
 0x6c2   : > { %v4228_v43 = vpop.f32.mrf.mxu1  ;;  %v2682_v44 = vadd.f32 %v2675_v41, %v2571_v11 }
 0x6c3   : > { %v2567_v45 = vpop.f32.mrf.mxu0 }
 0x6c4   : > { %v2678_v46 = vpop.f32.mrf.mxu1  ;;  %v2572_v47 = vadd.f32 %v2567_v45, %v2461_v39 }
 0x6c5   : > { %v4209_v48 = vpop.f32.mrf.mxu0 }
 0x6c6   : > { %v4229_v49 = vpop.f32.mrf.mxu1  ;;  %v2683_v50 = vadd.f32 %v2678_v46, %v2572_v47 }
 0x6df   : > { %v2786_v51 = vpop.f32.mrf.mxu0 }
 0x6e0   : > { %v2897_v52 = vpop.f32.mrf.mxu1  ;;  %v2793_v5 = vadd.f32 %v2786_v51, %v2682_v44 }
 0x6e1   : > { %v4248_v53 = vpop.f32.mrf.mxu0 }
 0x6e2   : > { %v4268_v54 = vpop.f32.mrf.mxu1  ;;  %v2904_v7 = vadd.f32 %v2897_v52, %v2793_v5 }
 0x6e3   : > { %v2789_v55 = vpop.f32.mrf.mxu0 }
 0x6e4   : > { %v2900_v56 = vpop.f32.mrf.mxu1  ;;  %v2794_v8 = vadd.f32 %v2789_v55, %v2683_v50 }
 0x6e5   : > { %v4249_v57 = vpop.f32.mrf.mxu0 }
 0x6e6   : > { %v4269_v58 = vpop.f32.mrf.mxu1  ;;  %v2905_v10 = vadd.f32 %v2900_v56, %v2794_v8 }
 0x6ff   : > { %v3008_v59 = vpop.f32.mrf.mxu0 }
 0x700   : > { %v3119_v60 = vpop.f32.mrf.mxu1  ;;  %v3015_v9 = vadd.f32 %v3008_v59, %v2904_v7 }
 0x701   : > { %v4288_v61 = vpop.f32.mrf.mxu0 }
 0x702   : > { %v4308_v62 = vpop.f32.mrf.mxu1  ;;  %v3126_v12 = vadd.f32 %v3119_v60, %v3015_v9 }
 0x703   : > { %v3011_v63 = vpop.f32.mrf.mxu0 }
 0x704   : > { %v3122_v1 = vpop.f32.mrf.mxu1  ;;  %v3016_v13 = vadd.f32 %v3011_v63, %v2905_v10 }
 0x705   : > { %v4289_v2 = vpop.f32.mrf.mxu0 }
 0x706   : > { %v4309_v4 = vpop.f32.mrf.mxu1  ;;  %v3127_v17 = vadd.f32 %v3122_v1, %v3016_v13 }
 0x71f   : > { %v3230_v14 = vpop.f32.mrf.mxu0 }
 0x720   : > { %v3237_v15 = vadd.f32 %v3230_v14, %v3126_v12 }
 0x721   : > { %v4328_v16 = vpop.f32.mrf.mxu0 }
 0x722   : > { %v3239_v18 = vmul.f32 %v3237_v15, %v4903_v3 }
 0x723   : > { %v3233_v19 = vpop.f32.mrf.mxu0 }
 0x724   : > { %3241 = vst [vmem:[%s187_s18] sm:$0xff] %v3239_v18  ;;  %v3238_v20 = vadd.f32 %v3233_v19, %v3127_v17 }
 0x725   : > { %v4329_v21 = vpop.f32.mrf.mxu0 }
 0x726   : > { %v3240_v22 = vmul.f32 %v3238_v20, %v4906_v6 }
 0x728   : > { %3242 = vst [vmem:[%s187_s18 + $0x8] sm:$0xff] %v3240_v22 }
 0x729 PF: > { %s14_s12 = sadd.s32 1, %s4605_s12  }
 0x72a   : > { %p11_p1 = scmp.ge.s32.totalorder %s14_s12, 4  }
 0x72c   :  { %13 = sbr.rel (!%p11_p1) target bundleno = 1 (0x1), region = 93 }
 0x731   :  { %3265 = vsyncpa [#allocation4], 1 }
 0x732   :  { %3267 = vsyncpa [#allocation4 + $0x1], 1 }

</bundles_post_ra>
